<compile_context>
chip_gen: v5e
topology: v5e:2x2
jax: 0.10.0
libtpu: 0.0.40
codegen_flags: <defaults>
</compile_context>

<pallas_src>
import jax
import jax.numpy as jnp
from jax.experimental import pallas as pl
from jax.experimental.pallas import tpu as pltpu

IN_DIM = 28 * 28          # 784
IN_PAD = 896              # 7 * 128  (zero-padded K for layer 1)
H1, H2, H3, OUT = 512, 256, 128, 1
OUT_PAD = 128             # lane-dense output width; col 0 is the real logit
TB_MAX = 512              # batch tile (rows per grid step)


def _leaky_relu(x, slope=0.2):
    return jnp.where(x > 0, x, slope * x)


def discriminator_kernel(x_ref,
                         w1_ref, b1_ref,
                         w2_ref, b2_ref,
                         w3_ref, b3_ref,
                         w4_ref, b4_ref,
                         o_ref):
    # Layer 1: (TB,896)bf16 @ (896,512)bf16 -> f32
    h = jnp.dot(x_ref[...], w1_ref[...], preferred_element_type=jnp.float32)
    h = _leaky_relu(h + b1_ref[...])          # f32 epilogue (v5e-friendly)
    # Dropout(0.3) -> identity (eval mode)

    # Layer 2: (TB,512) @ (512,256)
    h = jnp.dot(h.astype(jnp.bfloat16), w2_ref[...],
                preferred_element_type=jnp.float32)
    h = _leaky_relu(h + b2_ref[...])

    # Layer 3: (TB,256) @ (256,128)
    h = jnp.dot(h.astype(jnp.bfloat16), w3_ref[...],
                preferred_element_type=jnp.float32)
    h = _leaky_relu(h + b3_ref[...])

    # Layer 4: (TB,128) @ (128,128 padded) -> Sigmoid, lane-dense store.
    z = jnp.dot(h.astype(jnp.bfloat16), w4_ref[...],
                preferred_element_type=jnp.float32) + b4_ref[...]
    o_ref[...] = jax.nn.sigmoid(z).astype(o_ref.dtype)


def discriminator_forward(x, params):
    """x: (B, 1, 28, 28) or (B, 784) float32. Returns (B, 1) float32."""
    B = x.shape[0]
    x_flat = x.reshape(B, -1).astype(jnp.float32)
    assert x_flat.shape[1] == IN_DIM

    # Pick batch tile / padded batch (bf16 needs sublane multiples of 16).
    Bp16 = max(16, ((B + 15) // 16) * 16)
    if Bp16 <= TB_MAX:
        TB, Bp = Bp16, Bp16
    else:
        TB = TB_MAX
        Bp = ((B + TB - 1) // TB) * TB
    nb = Bp // TB

    # Zero-pad batch rows and K columns (784 -> 896), cast to bf16 for the MXU.
    x_pad = jnp.pad(x_flat, ((0, Bp - B), (0, IN_PAD - IN_DIM)))
    x_bf16 = x_pad.astype(jnp.bfloat16)

    (w1, b1), (w2, b2), (w3, b3), (w4, b4) = params

    # Weights: bf16 MXU inputs; pad w1 rows (K) and w4/b4 cols (lane-dense out).
    w1p = jnp.pad(w1, ((0, IN_PAD - IN_DIM), (0, 0))).astype(jnp.bfloat16)
    w2p = w2.astype(jnp.bfloat16)
    w3p = w3.astype(jnp.bfloat16)
    w4p = jnp.pad(w4, ((0, 0), (0, OUT_PAD - OUT))).astype(jnp.bfloat16)
    b4p = jnp.pad(b4, ((0, 0), (0, OUT_PAD - OUT))).astype(jnp.float32)

    resident = lambda shape: pl.BlockSpec(shape, lambda i: (0, 0))

    out = pl.pallas_call(
        discriminator_kernel,
        out_shape=jax.ShapeDtypeStruct((Bp, OUT_PAD), jnp.float32),
        grid_spec=pltpu.PrefetchScalarGridSpec(
            num_scalar_prefetch=0,
            grid=(nb,),
            in_specs=[
                pl.BlockSpec((TB, IN_PAD), lambda i: (i, 0)),   # pipelined x tile
                resident((IN_PAD, H1)), resident((1, H1)),
                resident((H1, H2)),     resident((1, H2)),
                resident((H2, H3)),     resident((1, H3)),
                resident((H3, OUT_PAD)), resident((1, OUT_PAD)),
            ],
            out_specs=pl.BlockSpec((TB, OUT_PAD), lambda i: (i, 0)),
        ),
        compiler_params=pltpu.CompilerParams(
            dimension_semantics=("parallel",),   # megacore on v7x
            vmem_limit_bytes=32 << 20,
        ),
    )(x_bf16, w1p, b1.astype(jnp.float32), w2p, b2.astype(jnp.float32),
      w3p, b3.astype(jnp.float32), w4p, b4p)

    return out[:B, :OUT]


def init_params(key):
    """Deterministic init mirroring nn.Linear's default U(-1/sqrt(fan_in), +1/sqrt(fan_in)).
    Weights are stored transposed: (in_features, out_features)."""
    dims = [(IN_DIM, H1), (H1, H2), (H2, H3), (H3, OUT)]
    params = []
    for (fan_in, fan_out) in dims:
        key, kw, kb = jax.random.split(key, 3)
        bound = 1.0 / (fan_in ** 0.5)
        w = jax.random.uniform(kw, (fan_in, fan_out), jnp.float32, -bound, bound)
        b = jax.random.uniform(kb, (1, fan_out), jnp.float32, -bound, bound)
        params.append((w, b))
    return params


def reference_forward(x, params):
    """Plain-JAX f32 reference for sanity checking."""
    h = x.reshape(x.shape[0], -1).astype(jnp.float32)
    (w1, b1), (w2, b2), (w3, b3), (w4, b4) = params
    h = _leaky_relu(h @ w1 + b1)
    h = _leaky_relu(h @ w2 + b2)
    h = _leaky_relu(h @ w3 + b3)
    return jax.nn.sigmoid(h @ w4 + b4)


if __name__ == "__main__":
    key = jax.random.PRNGKey(0)
    kx, kp = jax.random.split(key)
    params = init_params(kp)

    # Small-batch case (single grid step).
    B = 2
    x = jax.random.normal(kx, (B, 1, 28, 28), dtype=jnp.float32)  # NCHW like torch
    out = jax.block_until_ready(discriminator_forward(x, params))
    ref = reference_forward(x, params)
    assert out.shape == (B, 1), out.shape
    # bf16 MXU inputs (f32 accumulation) -> compare with a loose tolerance.
    assert jnp.allclose(out, ref, atol=1e-2, rtol=0.0), (out, ref)

    # Multi-tile case (exercises the batch grid / padded rows).
    B2 = 600
    x2 = jax.random.normal(kx, (B2, 1, 28, 28), dtype=jnp.float32)
    out2 = jax.block_until_ready(discriminator_forward(x2, params))
    ref2 = reference_forward(x2, params)
    assert out2.shape == (B2, 1), out2.shape
    assert jnp.allclose(out2, ref2, atol=1e-2, rtol=0.0), "multi-tile mismatch"

    print("KERNEL_OK")
</pallas_src>

<mosaic_0001>
module attributes {stable_mosaic.version = 11 : i64} {
  func.func @discriminator_kernel(%arg0: i32, %arg1: memref<16x896xbf16, #tpu.memory_space<vmem>>, %arg2: memref<896x512xbf16, #tpu.memory_space<vmem>>, %arg3: memref<1x512xf32, #tpu.memory_space<vmem>>, %arg4: memref<512x256xbf16, #tpu.memory_space<vmem>>, %arg5: memref<1x256xf32, #tpu.memory_space<vmem>>, %arg6: memref<256x128xbf16, #tpu.memory_space<vmem>>, %arg7: memref<1x128xf32, #tpu.memory_space<vmem>>, %arg8: memref<128x128xbf16, #tpu.memory_space<vmem>>, %arg9: memref<1x128xf32, #tpu.memory_space<vmem>>, %arg10: memref<16x128xf32, #tpu.memory_space<vmem>>) attributes {dimension_semantics = [#tpu.dimension_semantics<parallel>], iteration_bounds = array<i64: 1>, scalar_prefetch = 0 : i64, scratch_operands = 0 : i64, tpu.core_type = #tpu.core_type<tc>, window_params = [{transform_indices = @transform_0, window_bounds = array<i64: 16, 896>}, {pipeline_mode = #tpu.pipeline_mode<synchronous>, transform_indices = @transform_1, window_bounds = array<i64: 896, 512>}, {pipeline_mode = #tpu.pipeline_mode<synchronous>, transform_indices = @transform_2, window_bounds = array<i64: 1, 512>}, {pipeline_mode = #tpu.pipeline_mode<synchronous>, transform_indices = @transform_3, window_bounds = array<i64: 512, 256>}, {pipeline_mode = #tpu.pipeline_mode<synchronous>, transform_indices = @transform_4, window_bounds = array<i64: 1, 256>}, {pipeline_mode = #tpu.pipeline_mode<synchronous>, transform_indices = @transform_5, window_bounds = array<i64: 256, 128>}, {pipeline_mode = #tpu.pipeline_mode<synchronous>, transform_indices = @transform_6, window_bounds = array<i64: 1, 128>}, {pipeline_mode = #tpu.pipeline_mode<synchronous>, transform_indices = @transform_7, window_bounds = array<i64: 128, 128>}, {pipeline_mode = #tpu.pipeline_mode<synchronous>, transform_indices = @transform_8, window_bounds = array<i64: 1, 128>}, {transform_indices = @transform_9, window_bounds = array<i64: 16, 128>}]} {
    %c0 = arith.constant 0 : index
    %c0_0 = arith.constant 0 : index
    %0 = vector.load %arg1[%c0, %c0_0] : memref<16x896xbf16, #tpu.memory_space<vmem>>, vector<16x896xbf16>
    %c0_1 = arith.constant 0 : index
    %c0_2 = arith.constant 0 : index
    %1 = vector.load %arg2[%c0_1, %c0_2] : memref<896x512xbf16, #tpu.memory_space<vmem>>, vector<896x512xbf16>
    %cst = arith.constant dense<0.000000e+00> : vector<16x512xf32>
    %2 = tpu.matmul %0, %1, %cst {dimension_numbers = #tpu.dot_dimension_numbers<[1], [0], [0], [1], [0, 0, 1, 1], [], []>} : vector<16x896xbf16>, vector<896x512xbf16>, vector<16x512xf32> -> vector<16x512xf32>
    %c0_3 = arith.constant 0 : index
    %c0_4 = arith.constant 0 : index
    %3 = vector.load %arg3[%c0_3, %c0_4] : memref<1x512xf32, #tpu.memory_space<vmem>>, vector<1x512xf32>
    %4 = vector.broadcast %3 : vector<1x512xf32> to vector<16x512xf32>
    %5 = arith.addf %2, %4 : vector<16x512xf32>
    %cst_5 = arith.constant 0.000000e+00 : f32
    %6 = vector.broadcast %cst_5 : f32 to vector<16x512xf32>
    %7 = arith.cmpf ogt, %5, %6 : vector<16x512xf32>
    %cst_6 = arith.constant 2.000000e-01 : f32
    %8 = vector.broadcast %cst_6 : f32 to vector<16x512xf32>
    %9 = arith.mulf %8, %5 : vector<16x512xf32>
    %10 = arith.select %7, %5, %9 : vector<16x512xi1>, vector<16x512xf32>
    %11 = arith.truncf %10 : vector<16x512xf32> to vector<16x512xbf16>
    %c0_7 = arith.constant 0 : index
    %c0_8 = arith.constant 0 : index
    %12 = vector.load %arg4[%c0_7, %c0_8] : memref<512x256xbf16, #tpu.memory_space<vmem>>, vector<512x256xbf16>
    %cst_9 = arith.constant dense<0.000000e+00> : vector<16x256xf32>
    %13 = tpu.matmul %11, %12, %cst_9 {dimension_numbers = #tpu.dot_dimension_numbers<[1], [0], [0], [1], [0, 0, 1, 1], [], []>} : vector<16x512xbf16>, vector<512x256xbf16>, vector<16x256xf32> -> vector<16x256xf32>
    %c0_10 = arith.constant 0 : index
    %c0_11 = arith.constant 0 : index
    %14 = vector.load %arg5[%c0_10, %c0_11] : memref<1x256xf32, #tpu.memory_space<vmem>>, vector<1x256xf32>
    %15 = vector.broadcast %14 : vector<1x256xf32> to vector<16x256xf32>
    %16 = arith.addf %13, %15 : vector<16x256xf32>
    %cst_12 = arith.constant 0.000000e+00 : f32
    %17 = vector.broadcast %cst_12 : f32 to vector<16x256xf32>
    %18 = arith.cmpf ogt, %16, %17 : vector<16x256xf32>
    %cst_13 = arith.constant 2.000000e-01 : f32
    %19 = vector.broadcast %cst_13 : f32 to vector<16x256xf32>
    %20 = arith.mulf %19, %16 : vector<16x256xf32>
    %21 = arith.select %18, %16, %20 : vector<16x256xi1>, vector<16x256xf32>
    %22 = arith.truncf %21 : vector<16x256xf32> to vector<16x256xbf16>
    %c0_14 = arith.constant 0 : index
    %c0_15 = arith.constant 0 : index
    %23 = vector.load %arg6[%c0_14, %c0_15] : memref<256x128xbf16, #tpu.memory_space<vmem>>, vector<256x128xbf16>
    %cst_16 = arith.constant dense<0.000000e+00> : vector<16x128xf32>
    %24 = tpu.matmul %22, %23, %cst_16 {dimension_numbers = #tpu.dot_dimension_numbers<[1], [0], [0], [1], [0, 0, 1, 1], [], []>} : vector<16x256xbf16>, vector<256x128xbf16>, vector<16x128xf32> -> vector<16x128xf32>
    %c0_17 = arith.constant 0 : index
    %c0_18 = arith.constant 0 : index
    %25 = vector.load %arg7[%c0_17, %c0_18] : memref<1x128xf32, #tpu.memory_space<vmem>>, vector<1x128xf32>
    %26 = vector.broadcast %25 : vector<1x128xf32> to vector<16x128xf32>
    %27 = arith.addf %24, %26 : vector<16x128xf32>
    %cst_19 = arith.constant 0.000000e+00 : f32
    %28 = vector.broadcast %cst_19 : f32 to vector<16x128xf32>
    %29 = arith.cmpf ogt, %27, %28 : vector<16x128xf32>
    %cst_20 = arith.constant 2.000000e-01 : f32
    %30 = vector.broadcast %cst_20 : f32 to vector<16x128xf32>
    %31 = arith.mulf %30, %27 : vector<16x128xf32>
    %32 = arith.select %29, %27, %31 : vector<16x128xi1>, vector<16x128xf32>
    %33 = arith.truncf %32 : vector<16x128xf32> to vector<16x128xbf16>
    %c0_21 = arith.constant 0 : index
    %c0_22 = arith.constant 0 : index
    %34 = vector.load %arg8[%c0_21, %c0_22] : memref<128x128xbf16, #tpu.memory_space<vmem>>, vector<128x128xbf16>
    %cst_23 = arith.constant dense<0.000000e+00> : vector<16x128xf32>
    %35 = tpu.matmul %33, %34, %cst_23 {dimension_numbers = #tpu.dot_dimension_numbers<[1], [0], [0], [1], [0, 0, 1, 1], [], []>} : vector<16x128xbf16>, vector<128x128xbf16>, vector<16x128xf32> -> vector<16x128xf32>
    %c0_24 = arith.constant 0 : index
    %c0_25 = arith.constant 0 : index
    %36 = vector.load %arg9[%c0_24, %c0_25] : memref<1x128xf32, #tpu.memory_space<vmem>>, vector<1x128xf32>
    %37 = vector.broadcast %36 : vector<1x128xf32> to vector<16x128xf32>
    %38 = arith.addf %35, %37 : vector<16x128xf32>
    %39 = arith.negf %38 : vector<16x128xf32>
    %40 = math.exp %39 : vector<16x128xf32>
    %cst_26 = arith.constant 1.000000e+00 : f32
    %41 = vector.broadcast %cst_26 : f32 to vector<16x128xf32>
    %42 = arith.addf %41, %40 : vector<16x128xf32>
    %43 = arith.divf %41, %42 : vector<16x128xf32>
    %c0_27 = arith.constant 0 : index
    %c0_28 = arith.constant 0 : index
    %44 = vector.load %arg10[%c0_27, %c0_28] : memref<16x128xf32, #tpu.memory_space<vmem>>, vector<16x128xf32>
    tpu.vector_store %arg10[%c0_27, %c0_28], %43 {strides = array<i32>} : memref<16x128xf32, #tpu.memory_space<vmem>>, vector<16x128xf32>,
    return
  }
  func.func @transform_0(%arg0: i32) -> (i32, i32) {
    %c0_i32 = arith.constant 0 : i32
    %c0_i32_0 = arith.constant 0 : i32
    return %arg0, %c0_i32 : i32, i32
  }
  func.func @transform_1(%arg0: i32) -> (i32, i32) {
    %c0_i32 = arith.constant 0 : i32
    %c0_i32_0 = arith.constant 0 : i32
    %c0_i32_1 = arith.constant 0 : i32
    return %c0_i32, %c0_i32_0 : i32, i32
  }
  func.func @transform_2(%arg0: i32) -> (i32, i32) {
    %c0_i32 = arith.constant 0 : i32
    %c0_i32_0 = arith.constant 0 : i32
    %c0_i32_1 = arith.constant 0 : i32
    return %c0_i32, %c0_i32_0 : i32, i32
  }
  func.func @transform_3(%arg0: i32) -> (i32, i32) {
    %c0_i32 = arith.constant 0 : i32
    %c0_i32_0 = arith.constant 0 : i32
    %c0_i32_1 = arith.constant 0 : i32
    return %c0_i32, %c0_i32_0 : i32, i32
  }
  func.func @transform_4(%arg0: i32) -> (i32, i32) {
    %c0_i32 = arith.constant 0 : i32
    %c0_i32_0 = arith.constant 0 : i32
    %c0_i32_1 = arith.constant 0 : i32
    return %c0_i32, %c0_i32_0 : i32, i32
  }
  func.func @transform_5(%arg0: i32) -> (i32, i32) {
    %c0_i32 = arith.constant 0 : i32
    %c0_i32_0 = arith.constant 0 : i32
    %c0_i32_1 = arith.constant 0 : i32
    return %c0_i32, %c0_i32_0 : i32, i32
  }
  func.func @transform_6(%arg0: i32) -> (i32, i32) {
    %c0_i32 = arith.constant 0 : i32
    %c0_i32_0 = arith.constant 0 : i32
    %c0_i32_1 = arith.constant 0 : i32
    return %c0_i32, %c0_i32_0 : i32, i32
  }
  func.func @transform_7(%arg0: i32) -> (i32, i32) {
    %c0_i32 = arith.constant 0 : i32
    %c0_i32_0 = arith.constant 0 : i32
    %c0_i32_1 = arith.constant 0 : i32
    return %c0_i32, %c0_i32_0 : i32, i32
  }
  func.func @transform_8(%arg0: i32) -> (i32, i32) {
    %c0_i32 = arith.constant 0 : i32
    %c0_i32_0 = arith.constant 0 : i32
    %c0_i32_1 = arith.constant 0 : i32
    return %c0_i32, %c0_i32_0 : i32, i32
  }
  func.func @transform_9(%arg0: i32) -> (i32, i32) {
    %c0_i32 = arith.constant 0 : i32
    %c0_i32_0 = arith.constant 0 : i32
    return %arg0, %c0_i32 : i32, i32
  }
}

</mosaic_0001>

<bundles_post_ra>
// kernel: tpu_custom_call.1
= control target key start
LH: loop header
LB: loop body
LE: loop exit
PB: predicated region body
PF: predicated region fallthrough
CT: control target
= control target key end

     0   :  { %14 = vsyncpa [#allocation3], 0  ;;  %s4732_s0 = inlined_call_operand.hbm [shape: bf16[16,896], index: 0, kind: input, shape index: {}]   ;;  %s4733_s1 = inlined_call_operand.hbm [shape: bf16[896,512], index: 1, kind: input, shape index: {}]   ;;  %s4734_s2 = inlined_call_operand.hbm [shape: f32[1,512], index: 2, kind: input, shape index: {}]   ;;  %s4735_s3 = inlined_call_operand.hbm [shape: bf16[512,256], index: 3, kind: input, shape index: {}]   ;;  %s4736_s4 = inlined_call_operand.vmem [shape: f32[1,256], index: 4, kind: input, shape index: {}]   ;;  %s4737_s5 = inlined_call_operand.hbm [shape: bf16[256,128], index: 5, kind: input, shape index: {}]   ;;  %s4738_s6 = inlined_call_operand.vmem [shape: f32[1,128], index: 6, kind: input, shape index: {}]   ;;  %s4739_s7 = inlined_call_operand.hbm [shape: bf16[128,128], index: 7, kind: input, shape index: {}]   ;;  %s4740_s8 = inlined_call_operand.vmem [shape: f32[1,128], index: 8, kind: input, shape index: {}]   ;;  %s4741_s9 = inlined_call_operand.hbm [shape: f32[16,128], index: 9, kind: output, shape index: {}]  }
   0x1   :  { %15 = vsyncpa [#allocation6], 0 }
   0x2   :  { %16 = vsyncpa [#allocation9], 0 }
   0x3   :  { %17 = vsyncpa [#allocation12], 0  ;;  %s36_s11 = sshll.u32 %s4733_s1, 4  ;;  %s37_s11 = int_to_ptr.hbm [resolvable:$true] %s36_s11 }
   0x4   :  { %18 = vsyncpa [#allocation4], 0  ;;  %s4570_s12 = smov [#allocation5]   ;;  %s60_s16 = sshll.u32 %s4735_s3, 4  ;;  %s61_s16 = int_to_ptr.hbm [resolvable:$true] %s60_s16 }
   0x5   :  { %s38_s13 = sshll.u32 %s4570_s12, 4  ;;  %s4571_s17 = smov 256   ;;  %s39_s13 = int_to_ptr.vmem [resolvable:$true] %s38_s13 }
   0x6   :  { %s4572_s18 = smov 16   ;;  %s4573_s19 = smov [#allocation8]  }
   0x7   :  { %44 = dma.hbm_to_vmem [thread:$0]  %s37_s11, 28672, %s39_s13, [#allocation6], %s4571_s17, %s4571_s17, %s4572_s18  }
   0x8   :  { %s62_s20 = sshll.u32 %s4573_s19, 4  ;;  %s4574_s21 = smov 128   ;;  %s63_s20 = int_to_ptr.vmem [resolvable:$true] %s62_s20 }
   0x9   :  { %s4575_s22 = smov 8   ;;  %s23_s24 = sshll.u32 %s4732_s0, 4  ;;  %s24_s24 = int_to_ptr.hbm [resolvable:$true] %s23_s24 }
   0xa   :  { %68 = dma.hbm_to_vmem [thread:$0]  %s61_s16, 8192, %s63_s20, [#allocation9], %s4574_s21, %s4574_s21, %s4575_s22  }
   0xb   :  { %s4576_s25 = smov [#allocation2]   ;;  %s50_s28 = sshll.u32 %s4734_s2, 4  ;;  %s51_s28 = int_to_ptr.hbm [resolvable:$true] %s50_s28 }
   0xc   :  { %s25_s3 = sshll.u32 %s4576_s25, 4  ;;  %s4577_s29 = smov 448   ;;  %s26_s3 = int_to_ptr.vmem [resolvable:$true] %s25_s3 }
   0xd   :  { %s4578_s30 = smov 28   ;;  %s4579_s10 = smov [#allocation7]  }
   0xe   :  { %31 = dma.hbm_to_vmem [thread:$0]  %s24_s24, 896, %s26_s3, [#allocation3], %s4577_s29, %s4577_s29, %s4578_s30  }
   0xf   :  { %s52_s11 = sshll.u32 %s4579_s10, 4  ;;  %s75_s14 = sshll.u32 %s4737_s5, 4  ;;  %s53_s11 = int_to_ptr.vmem [resolvable:$true] %s52_s11  ;;  %s76_s14 = int_to_ptr.hbm [resolvable:$true] %s75_s14 }
  0x10   :  { %55 = dma.hbm_to_vmem [thread:$0]  %s51_s28, 64, %s53_s11, [#allocation6]  }
  0x11   :  { %s4580_s0 = smov [#allocation10]   ;;  %s90_s2 = sshll.u32 %s4739_s7, 4  ;;  %s91_s2 = int_to_ptr.hbm [resolvable:$true] %s90_s2 }
  0x12   :  { %s77_s15 = sshll.u32 %s4580_s0, 4  ;;  %s4581_s18 = smov 64   ;;  %s78_s15 = int_to_ptr.vmem [resolvable:$true] %s77_s15 }
  0x13   :  { %s4582_s19 = smov 4   ;;  %s4583_s20 = smov [#allocation11]  }
  0x14   :  { %83 = dma.hbm_to_vmem [thread:$0]  %s76_s14, 2048, %s78_s15, [#allocation9], %s4581_s18, %s4581_s18, %s4582_s19  }
  0x15   :  { %s92_s1 = sshll.u32 %s4583_s20, 4  ;;  %s93_s1 = int_to_ptr.vmem [resolvable:$true] %s92_s1 }
  0x16   :  { %98 = dma.hbm_to_vmem [thread:$0]  %s91_s2, 1024, %s93_s1, [#allocation12], %s4581_s18, %s4581_s18, %s4582_s19  }
  0x17   :  { %4560 = dma.done.wait [#allocation3], 896  }
  0x18   :  { %4561 = vsyncadd [#allocation3], 4294966400 }
  0x19   :  { %4562 = dma.done.wait [#allocation6], 28736  }
  0x1a   :  { %4563 = vsyncadd [#allocation6], 4294938560 }
  0x1b   :  { %4564 = dma.done.wait [#allocation9], 10240  }
  0x1c   :  { %4565 = vsyncadd [#allocation9], 4294957056 }
  0x1d   :  { %4566 = dma.done.wait [#allocation12], 1024  }
  0x1e   :  { %4567 = vsyncadd [#allocation12], 4294966272  ;;  %v2912_v0 = vld [vmem:[#allocation5 + $0xe0] sm:$0xf]  ;;  %v4085_v1 = vld [vmem:[#allocation5 + $0xec] sm:$0xf0] }
  0x1f   :  { %v3040_v2 = vld [vmem:[#allocation5 + $0x1e0] sm:$0xf]  ;;  %v2913_v3 = vor.u32 %v4085_v1, %v2912_v0  ;;  %v4117_v4 = vld [vmem:[#allocation5 + $0x1ec] sm:$0xf0]  ;;  %s2754_s27 = sshll.u32 %s4741_s9, 4  ;;  %s2755_s27 = int_to_ptr.hbm [resolvable:$true] %s2754_s27 }
  0x20   :  { %v3168_v5 = vld [vmem:[#allocation5 + $0x2e0] sm:$0xf]  ;;  %v4149_v6 = vld [vmem:[#allocation5 + $0x2ec] sm:$0xf0]  ;;  %v3041_v7 = vor.u32 %v4117_v4, %v3040_v2 }
  0x21   :  { %v3169_v8 = vor.u32 %v4149_v6, %v3168_v5  ;;  %v3296_v9 = vld [vmem:[#allocation5 + $0x3e0] sm:$0xf]  ;;  %v4181_v10 = vld [vmem:[#allocation5 + $0x3ec] sm:$0xf0]  ;;  %1523 = vmatpush.bf16.msra.mxu0 %v2913_v3 }
  0x22   :  { %v2896_v11 = vld [vmem:[#allocation5 + $0xc0] sm:$0xf]  ;;  %v3297_v12 = vor.u32 %v4181_v10, %v3296_v9  ;;  %v4081_v13 = vld [vmem:[#allocation5 + $0xcc] sm:$0xf0]  ;;  %1537 = vmatpush.bf16.msra.mxu1 %v3041_v7 }
  0x23   :  { %v3024_v14 = vld [vmem:[#allocation5 + $0x1c0] sm:$0xf]  ;;  %v4113_v15 = vld [vmem:[#allocation5 + $0x1cc] sm:$0xf0]  ;;  %1551 = vmatpush.bf16.msra.mxu2 %v3169_v8  ;;  %v2897_v16 = vor.u32 %v4081_v13, %v2896_v11 }
  0x24   :  { %v3025_v17 = vor.u32 %v4113_v15, %v3024_v14  ;;  %v3152_v18 = vld [vmem:[#allocation5 + $0x2c0] sm:$0xf]  ;;  %v4145_v19 = vld [vmem:[#allocation5 + $0x2cc] sm:$0xf0]  ;;  %1565 = vmatpush.bf16.msra.mxu3 %v3297_v12 }
  0x25   :  { %v3280_v20 = vld [vmem:[#allocation5 + $0x3c0] sm:$0xf]  ;;  %v3153_v21 = vor.u32 %v4145_v19, %v3152_v18  ;;  %v4177_v22 = vld [vmem:[#allocation5 + $0x3cc] sm:$0xf0]  ;;  %1524 = vmatpush.bf16.msra.mxu0 %v2897_v16 }
  0x26   :  { %v2880_v23 = vld [vmem:[#allocation5 + $0xa0] sm:$0xf]  ;;  %v4077_v24 = vld [vmem:[#allocation5 + $0xac] sm:$0xf0]  ;;  %v3281_v25 = vor.u32 %v4177_v22, %v3280_v20  ;;  %1538 = vmatpush.bf16.msra.mxu1 %v3025_v17 }
  0x27   :  { %v3008_v26 = vld [vmem:[#allocation5 + $0x1a0] sm:$0xf]  ;;  %v4109_v27 = vld [vmem:[#allocation5 + $0x1ac] sm:$0xf0]  ;;  %v2881_v29 = vor.u32 %v4077_v24, %v2880_v23  ;;  %1552 = vmatpush.bf16.msra.mxu2 %v3153_v21 }
  0x28   :  { %v3136_v28 = vld [vmem:[#allocation5 + $0x2a0] sm:$0xf]  ;;  %v4141_v30 = vld [vmem:[#allocation5 + $0x2ac] sm:$0xf0]  ;;  %v3009_v33 = vor.u32 %v4109_v27, %v3008_v26  ;;  %1566 = vmatpush.bf16.msra.mxu3 %v3281_v25 }
  0x29   :  { %v3264_v31 = vld [vmem:[#allocation5 + $0x3a0] sm:$0xf]  ;;  %v4173_v32 = vld [vmem:[#allocation5 + $0x3ac] sm:$0xf0]  ;;  %v3137_v34 = vor.u32 %v4141_v30, %v3136_v28  ;;  %1525 = vmatpush.bf16.msra.mxu0 %v2881_v29 }
  0x2a   :  { %v2864_v35 = vld [vmem:[#allocation5 + $0x80] sm:$0xf]  ;;  %v4073_v36 = vld [vmem:[#allocation5 + $0x8c] sm:$0xf0]  ;;  %v3265_v38 = vor.u32 %v4173_v32, %v3264_v31  ;;  %1539 = vmatpush.bf16.msra.mxu1 %v3009_v33 }
  0x2b   :  { %v2992_v37 = vld [vmem:[#allocation5 + $0x180] sm:$0xf]  ;;  %v4105_v39 = vld [vmem:[#allocation5 + $0x18c] sm:$0xf0]  ;;  %v2865_v44 = vor.u32 %v4073_v36, %v2864_v35  ;;  %1553 = vmatpush.bf16.msra.mxu2 %v3137_v34 }
  0x2c   :  { %v3120_v40 = vld [vmem:[#allocation5 + $0x280] sm:$0xf]  ;;  %v4137_v41 = vld [vmem:[#allocation5 + $0x28c] sm:$0xf0]  ;;  %v2993_v45 = vor.u32 %v4105_v39, %v2992_v37  ;;  %1567 = vmatpush.bf16.msra.mxu3 %v3265_v38  ;;  %v4083_v37 = vld [vmem:[#allocation5 + $0xe4] sm:$0xf] }
  0x2d   :  { %v3248_v42 = vld [vmem:[#allocation5 + $0x380] sm:$0xf]  ;;  %v4169_v43 = vld [vmem:[#allocation5 + $0x38c] sm:$0xf0]  ;;  %v3121_v46 = vor.u32 %v4137_v41, %v3120_v40  ;;  %1526 = vmatpush.bf16.msra.mxu0 %v2865_v44  ;;  %v2914_v38 = vld [vmem:[#allocation5 + $0xf0] sm:$0xf0] }
  0x2e   :  { %v2848_v47 = vld [vmem:[#allocation5 + $0x60] sm:$0xf]  ;;  %v4069_v48 = vld [vmem:[#allocation5 + $0x6c] sm:$0xf0]  ;;  %v3249_v50 = vor.u32 %v4169_v43, %v3248_v42  ;;  %1540 = vmatpush.bf16.msra.mxu1 %v2993_v45 }
  0x2f   :  { %v2976_v49 = vld [vmem:[#allocation5 + $0x160] sm:$0xf]  ;;  %v4101_v51 = vld [vmem:[#allocation5 + $0x16c] sm:$0xf0]  ;;  %v2849_v56 = vor.u32 %v4069_v48, %v2848_v47  ;;  %1554 = vmatpush.bf16.msra.mxu2 %v3121_v46  ;;  %v2917_v48 = vor.u32 %v4083_v37, %v2914_v38 }
  0x30   :  { %v3104_v52 = vld [vmem:[#allocation5 + $0x260] sm:$0xf]  ;;  %v4133_v53 = vld [vmem:[#allocation5 + $0x26c] sm:$0xf0]  ;;  %v2977_v57 = vor.u32 %v4101_v51, %v2976_v49  ;;  %1568 = vmatpush.bf16.msra.mxu3 %v3249_v50  ;;  %v4079_v50 = vld [vmem:[#allocation5 + $0xc4] sm:$0xf] }
  0x31   :  { %v3232_v54 = vld [vmem:[#allocation5 + $0x360] sm:$0xf]  ;;  %v4165_v55 = vld [vmem:[#allocation5 + $0x36c] sm:$0xf0]  ;;  %v3105_v58 = vor.u32 %v4133_v53, %v3104_v52  ;;  %1527 = vmatpush.bf16.msra.mxu0 %v2849_v56  ;;  %v2898_v51 = vld [vmem:[#allocation5 + $0xd0] sm:$0xf0] }
  0x32   :  { %v2832_v59 = vld [vmem:[#allocation5 + $0x40] sm:$0xf]  ;;  %v4065_v60 = vld [vmem:[#allocation5 + $0x4c] sm:$0xf0]  ;;  %v3233_v62 = vor.u32 %v4165_v55, %v3232_v54  ;;  %1541 = vmatpush.bf16.msra.mxu1 %v2977_v57  ;;  %v2772_v52 = vld [vmem:[#allocation2] sm:$0xf] }
  0x33   :  { %v2960_v61 = vld [vmem:[#allocation5 + $0x140] sm:$0xf]  ;;  %v4097_v63 = vld [vmem:[#allocation5 + $0x14c] sm:$0xf0]  ;;  %v2833_v4 = vor.u32 %v4065_v60, %v2832_v59  ;;  %1555 = vmatpush.bf16.msra.mxu2 %v3105_v58  ;;  %v4051_v53 = vld [vmem:[#allocation2 + $0x18] sm:$0xf0] }
  0x34   :  { %v3088_v0 = vld [vmem:[#allocation5 + $0x240] sm:$0xf]  ;;  %v4129_v1 = vld [vmem:[#allocation5 + $0x24c] sm:$0xf0]  ;;  %v2961_v5 = vor.u32 %v4097_v63, %v2960_v61  ;;  %1569 = vmatpush.bf16.msra.mxu3 %v3233_v62  ;;  %v4656_v57 = vor.u32 %v4051_v53, %v2772_v52  ;;  %v4052_v58 = vld [vmem:[#allocation2 + $0x20] sm:$0xf0] }
  0x35   :  { %v3216_v2 = vld [vmem:[#allocation5 + $0x340] sm:$0xf]  ;;  %v4161_v3 = vld [vmem:[#allocation5 + $0x34c] sm:$0xf0]  ;;  %v3089_v6 = vor.u32 %v4129_v1, %v3088_v0  ;;  %1528 = vmatpush.bf16.msra.mxu0 %v2833_v4  ;;  %v2901_v1 = vor.u32 %v4079_v50, %v2898_v51  ;;  %v4075_v4 = vld [vmem:[#allocation5 + $0xa4] sm:$0xf] }
  0x36   :  { %v2816_v7 = vld [vmem:[#allocation5 + $0x20] sm:$0xf]  ;;  %v4061_v8 = vld [vmem:[#allocation5 + $0x2c] sm:$0xf0]  ;;  %v3217_v10 = vor.u32 %v4161_v3, %v3216_v2  ;;  %1542 = vmatpush.bf16.msra.mxu1 %v2961_v5  ;;  %v2882_v5 = vld [vmem:[#allocation5 + $0xb0] sm:$0xf0] }
  0x37   :  { %v2944_v9 = vld [vmem:[#allocation5 + $0x120] sm:$0xf]  ;;  %v4093_v11 = vld [vmem:[#allocation5 + $0x12c] sm:$0xf0]  ;;  %v2817_v16 = vor.u32 %v4061_v8, %v2816_v7  ;;  %1556 = vmatpush.bf16.msra.mxu2 %v3089_v6  ;;  %v4048_v6 = vld [vmem:[#allocation2 + $0x4] sm:$0xf] }
  0x38   :  { %v3072_v12 = vld [vmem:[#allocation5 + $0x220] sm:$0xf]  ;;  %v4125_v13 = vld [vmem:[#allocation5 + $0x22c] sm:$0xf0]  ;;  %v2945_v19 = vor.u32 %v4093_v11, %v2944_v9  ;;  %1570 = vmatpush.bf16.msra.mxu3 %v3217_v10  ;;  %v2774_v7 = vld [vmem:[#allocation2 + $0x1c] sm:$0xf0] }
  0x39   :  { %v3200_v14 = vld [vmem:[#allocation5 + $0x320] sm:$0xf]  ;;  %v4157_v15 = vld [vmem:[#allocation5 + $0x32c] sm:$0xf0]  ;;  %v3073_v20 = vor.u32 %v4125_v13, %v3072_v12  ;;  %1529 = vmatpush.bf16.msra.mxu0 %v2817_v16  ;;  %v4662_v11 = vor.u32 %v4048_v6, %v2774_v7  ;;  %v4055_v7 = vld [vmem:[#allocation5 + $0x4] sm:$0xf] }
  0x3a   :  { %v2800_v17 = vld [vmem:[#allocation5] sm:$0xf]  ;;  %v4057_v18 = vld [vmem:[#allocation5 + $0xc] sm:$0xf0]  ;;  %v3201_v24 = vor.u32 %v4157_v15, %v3200_v14  ;;  %1543 = vmatpush.bf16.msra.mxu1 %v2945_v19  ;;  %v4049_v19 = vld [vmem:[#allocation2 + $0xc] sm:$0xf] }
  0x3b   :  { %v2928_v21 = vld [vmem:[#allocation5 + $0x100] sm:$0xf]  ;;  %v4089_v22 = vld [vmem:[#allocation5 + $0x10c] sm:$0xf0]  ;;  %v2801_v31 = vor.u32 %v4057_v18, %v2800_v17  ;;  %1557 = vmatpush.bf16.msra.mxu2 %v3073_v20  ;;  %v2885_v17 = vor.u32 %v4075_v4, %v2882_v5 }
  0x3c   :  { %v3056_v23 = vld [vmem:[#allocation5 + $0x200] sm:$0xf]  ;;  %v4121_v25 = vld [vmem:[#allocation5 + $0x20c] sm:$0xf0]  ;;  %v2929_v35 = vor.u32 %v4089_v22, %v2928_v21  ;;  %1571 = vmatpush.bf16.msra.mxu3 %v3201_v24  ;;  %v4071_v21 = vld [vmem:[#allocation5 + $0x84] sm:$0xf] }
  0x3d   :  { %v3184_v26 = vld [vmem:[#allocation5 + $0x300] sm:$0xf]  ;;  %v4153_v27 = vld [vmem:[#allocation5 + $0x30c] sm:$0xf0]  ;;  %v3057_v36 = vor.u32 %v4121_v25, %v3056_v23  ;;  %1530 = vmatpush.bf16.msra.mxu0 %v2801_v31  ;;  %v2866_v22 = vld [vmem:[#allocation5 + $0x90] sm:$0xf0] }
  0x3e   :  { %v3424_v28 = vld [vmem:[#allocation5 + $0x4e0] sm:$0xf]  ;;  %v4213_v29 = vld [vmem:[#allocation5 + $0x4ec] sm:$0xf0]  ;;  %v3185_v39 = vor.u32 %v4153_v27, %v3184_v26  ;;  %1544 = vmatpush.bf16.msra.mxu1 %v2929_v35  ;;  %v2850_v35 = vld [vmem:[#allocation5 + $0x70] sm:$0xf0] }
  0x3f   :  { %v3552_v30 = vld [vmem:[#allocation5 + $0x5e0] sm:$0xf]  ;;  %v4245_v32 = vld [vmem:[#allocation5 + $0x5ec] sm:$0xf0]  ;;  %v3425_v40 = vor.u32 %v4213_v29, %v3424_v28  ;;  %1558 = vmatpush.bf16.msra.mxu2 %v3057_v36 }
  0x40   :  { %v3680_v33 = vld [vmem:[#allocation5 + $0x6e0] sm:$0xf]  ;;  %v4277_v34 = vld [vmem:[#allocation5 + $0x6ec] sm:$0xf0]  ;;  %v3553_v43 = vor.u32 %v4245_v32, %v3552_v30  ;;  %1572 = vmatpush.bf16.msra.mxu3 %v3185_v39  ;;  %1531 = vmatmul.bf16.vlgmr.msra.gmra.mxu0 %v4656_v57  ;;  %v2869_v30 = vor.u32 %v4071_v21, %v2866_v22  ;;  %v2788_v22 = vld [vmem:[#allocation2 + $0x10] sm:$0xf] }
  0x41   :  { %v3408_v41 = vld [vmem:[#allocation5 + $0x4c0] sm:$0xf]  ;;  %v4209_v42 = vld [vmem:[#allocation5 + $0x4cc] sm:$0xf0]  ;;  %v3681_v44 = vor.u32 %v4277_v34, %v3680_v33  ;;  %1579 = vmatpush.bf16.msrb.mxu0 %v3425_v40  ;;  %1545 = vmatmul.bf16.vlgmr.msra.gmra.mxu1 %v4662_v11  ;;  %v4067_v34 = vld [vmem:[#allocation5 + $0x64] sm:$0xf] }
  0x42   :  { %v3536_v45 = vld [vmem:[#allocation5 + $0x5c0] sm:$0xf]  ;;  %v4241_v46 = vld [vmem:[#allocation5 + $0x5cc] sm:$0xf0]  ;;  %v3409_v55 = vor.u32 %v4209_v42, %v3408_v41  ;;  %1593 = vmatpush.bf16.msrb.mxu1 %v3553_v43  ;;  %v2853_v42 = vor.u32 %v4067_v34, %v2850_v35  ;;  %v3026_v34 = vld [vmem:[#allocation5 + $0x1d0] sm:$0xf0] }
  0x43   :  { %v3664_v47 = vld [vmem:[#allocation5 + $0x6c0] sm:$0xf]  ;;  %v4273_v49 = vld [vmem:[#allocation5 + $0x6cc] sm:$0xf0]  ;;  %1607 = vmatpush.bf16.msrb.mxu2 %v3681_v44  ;;  %v3537_v59 = vor.u32 %v4241_v46, %v3536_v45  ;;  %v4063_v46 = vld [vmem:[#allocation5 + $0x44] sm:$0xf] }
  0x44   :  { %v2780_v54 = vld [vmem:[#allocation2 + $0x8] sm:$0xf]  ;;  %v3392_v56 = vld [vmem:[#allocation5 + $0x4a0] sm:$0xf]  ;;  %v3665_v60 = vor.u32 %v4273_v49, %v3664_v47  ;;  %1621 = vmatpush.bf16.msrb.mxu3 %v2917_v48  ;;  %v2834_v47 = vld [vmem:[#allocation5 + $0x50] sm:$0xf0] }
  0x45   :  { %v4205_v61 = vld [vmem:[#allocation5 + $0x4ac] sm:$0xf0]  ;;  %v3520_v62 = vld [vmem:[#allocation5 + $0x5a0] sm:$0xf]  ;;  %v4658_v0 = vor.u32 %v4052_v58, %v2780_v54  ;;  %1580 = vmatpush.bf16.msrb.mxu0 %v3409_v55  ;;  %v2837_v54 = vor.u32 %v4063_v46, %v2834_v47  ;;  %v4143_v35 = vld [vmem:[#allocation5 + $0x2c4] sm:$0xf] }
  0x46   :  { %v4237_v63 = vld [vmem:[#allocation5 + $0x5ac] sm:$0xf0]  ;;  %v3648_v2 = vld [vmem:[#allocation5 + $0x6a0] sm:$0xf]  ;;  %v3393_v8 = vor.u32 %v4205_v61, %v3392_v56  ;;  %1594 = vmatpush.bf16.msrb.mxu1 %v3537_v59  ;;  %v4059_v59 = vld [vmem:[#allocation5 + $0x24] sm:$0xf] }
  0x47   :  { %v4269_v3 = vld [vmem:[#allocation5 + $0x6ac] sm:$0xf0]  ;;  %1559 = vmatmul.bf16.vlgmr.msra.gmra.mxu2 %v4658_v0  ;;  %v3376_v9 = vld [vmem:[#allocation5 + $0x480] sm:$0xf]  ;;  %v3521_v12 = vor.u32 %v4237_v63, %v3520_v62 }
  0x48   :  { %v4201_v10 = vld [vmem:[#allocation5 + $0x48c] sm:$0xf0]  ;;  %1608 = vmatpush.bf16.msrb.mxu2 %v3665_v60  ;;  %v3649_v13 = vor.u32 %v4269_v3, %v3648_v2  ;;  %v3504_v14 = vld [vmem:[#allocation5 + $0x580] sm:$0xf]  ;;  %1622 = vmatpush.bf16.msrb.mxu3 %v2901_v1  ;;  %v2818_v60 = vld [vmem:[#allocation5 + $0x30] sm:$0xf0] }
  0x49   :  { %v4233_v15 = vld [vmem:[#allocation5 + $0x58c] sm:$0xf0]  ;;  %v3632_v16 = vld [vmem:[#allocation5 + $0x680] sm:$0xf]  ;;  %1581 = vmatpush.bf16.msrb.mxu0 %v3393_v8  ;;  %v3377_v24 = vor.u32 %v4201_v10, %v3376_v9  ;;  %v2821_v8 = vor.u32 %v4059_v59, %v2818_v60  ;;  %v2802_v9 = vld [vmem:[#allocation5 + $0x10] sm:$0xf0] }
  0x4a   :  { %v4265_v18 = vld [vmem:[#allocation5 + $0x68c] sm:$0xf0]  ;;  %1595 = vmatpush.bf16.msrb.mxu1 %v3521_v12  ;;  %v3505_v25 = vor.u32 %v4233_v15, %v3504_v14  ;;  %v3360_v27 = vld [vmem:[#allocation5 + $0x460] sm:$0xf]  ;;  %v4115_v10 = vld [vmem:[#allocation5 + $0x1e4] sm:$0xf] }
  0x4b   :  { %v2782_v20 = vld [vmem:[#allocation2 + $0x24] sm:$0xf0]  ;;  %v3633_v26 = vor.u32 %v4265_v18, %v3632_v16  ;;  %v3488_v29 = vld [vmem:[#allocation5 + $0x560] sm:$0xf]  ;;  %v3042_v12 = vld [vmem:[#allocation5 + $0x1f0] sm:$0xf0] }
  0x4c   :  { %v4665_v23 = vor.u32 %v4049_v19, %v2782_v20  ;;  %1609 = vmatpush.bf16.msrb.mxu2 %v3649_v13  ;;  %v4197_v28 = vld [vmem:[#allocation5 + $0x46c] sm:$0xf0]  ;;  %1623 = vmatpush.bf16.msrb.mxu3 %v2885_v17  ;;  %v3616_v32 = vld [vmem:[#allocation5 + $0x660] sm:$0xf]  ;;  %v4147_v13 = vld [vmem:[#allocation5 + $0x2e4] sm:$0xf] }
  0x4d   :  { %v4229_v31 = vld [vmem:[#allocation5 + $0x56c] sm:$0xf0]  ;;  %1582 = vmatpush.bf16.msrb.mxu0 %v3377_v24  ;;  %v3361_v36 = vor.u32 %v4197_v28, %v3360_v27  ;;  %v3344_v39 = vld [vmem:[#allocation5 + $0x440] sm:$0xf]  ;;  %v3170_v14 = vld [vmem:[#allocation5 + $0x2f0] sm:$0xf0]  ;;  %v3045_v27 = vor.u32 %v4115_v10, %v3042_v12 }
  0x4e   :  { %v4261_v33 = vld [vmem:[#allocation5 + $0x66c] sm:$0xf0]  ;;  %1573 = vmatmul.bf16.vlgmr.msra.gmra.mxu3 %v4665_v23  ;;  %1596 = vmatpush.bf16.msrb.mxu1 %v3505_v25  ;;  %v3489_v37 = vor.u32 %v4229_v31, %v3488_v29  ;;  %v3472_v41 = vld [vmem:[#allocation5 + $0x540] sm:$0xf]  ;;  %v4179_v15 = vld [vmem:[#allocation5 + $0x3e4] sm:$0xf]  ;;  %v3173_v31 = vor.u32 %v4147_v13, %v3170_v14 }
  0x4f   :  { %v3617_v38 = vor.u32 %v4261_v33, %v3616_v32  ;;  %v4193_v40 = vld [vmem:[#allocation5 + $0x44c] sm:$0xf0]  ;;  %v3600_v44 = vld [vmem:[#allocation5 + $0x640] sm:$0xf]  ;;  %v3298_v17 = vld [vmem:[#allocation5 + $0x3f0] sm:$0xf0] }
  0x50   :  { %1610 = vmatpush.bf16.msrb.mxu2 %v3633_v26  ;;  %1624 = vmatpush.bf16.msrb.mxu3 %v2869_v30  ;;  %v4225_v43 = vld [vmem:[#allocation5 + $0x54c] sm:$0xf0]  ;;  %v3345_v48 = vor.u32 %v4193_v40, %v3344_v39  ;;  %v3328_v51 = vld [vmem:[#allocation5 + $0x420] sm:$0xf]  ;;  %v4211_v18 = vld [vmem:[#allocation5 + $0x4e4] sm:$0xf]  ;;  %v2805_v26 = vor.u32 %v4055_v7, %v2802_v9  ;;  %v3301_v32 = vor.u32 %v4179_v15, %v3298_v17 }
  0x51   :  { %v4257_v45 = vld [vmem:[#allocation5 + $0x64c] sm:$0xf0]  ;;  %1583 = vmatpush.bf16.msrb.mxu0 %v3361_v36  ;;  %v3473_v49 = vor.u32 %v4225_v43, %v3472_v41  ;;  %v3456_v53 = vld [vmem:[#allocation5 + $0x520] sm:$0xf]  ;;  %v3426_v19 = vld [vmem:[#allocation5 + $0x4f0] sm:$0xf0] }
  0x52   :  { %1597 = vmatpush.bf16.msrb.mxu1 %v3489_v37  ;;  %v3601_v50 = vor.u32 %v4257_v45, %v3600_v44  ;;  %v4189_v52 = vld [vmem:[#allocation5 + $0x42c] sm:$0xf0]  ;;  %v3584_v56 = vld [vmem:[#allocation5 + $0x620] sm:$0xf]  ;;  %v4053_v24 = vld [vmem:[#allocation2 + $0x28] sm:$0xf0]  ;;  %v3429_v36 = vor.u32 %v4211_v18, %v3426_v19 }
  0x53   :  { %v4221_v55 = vld [vmem:[#allocation5 + $0x52c] sm:$0xf0]  ;;  %v3312_v61 = vld [vmem:[#allocation5 + $0x400] sm:$0xf]  ;;  %v3329_v62 = vor.u32 %v4189_v52, %v3328_v51  ;;  %v4054_v28 = vld [vmem:[#allocation2 + $0x30] sm:$0xf0]  ;;  %v4668_v37 = vor.u32 %v4053_v24, %v2788_v22 }
  0x54   :  { %1611 = vmatpush.bf16.msrb.mxu2 %v3617_v38  ;;  %1625 = vmatpush.bf16.msrb.mxu3 %v2853_v42  ;;  %v4253_v58 = vld [vmem:[#allocation5 + $0x62c] sm:$0xf0]  ;;  %v3440_v1 = vld [vmem:[#allocation5 + $0x500] sm:$0xf]  ;;  %v3457_v3 = vor.u32 %v4221_v55, %v3456_v53  ;;  %v4050_v29 = vld [vmem:[#allocation2 + $0x14] sm:$0xf] }
  0x55   :  { %1584 = vmatpush.bf16.msrb.mxu0 %v3345_v48  ;;  %v4185_v63 = vld [vmem:[#allocation5 + $0x40c] sm:$0xf0]  ;;  %v3585_v4 = vor.u32 %v4253_v58, %v3584_v56  ;;  %v3568_v5 = vld [vmem:[#allocation5 + $0x600] sm:$0xf]  ;;  %v2790_v30 = vld [vmem:[#allocation2 + $0x2c] sm:$0xf0] }
  0x56   :  { %v4217_v2 = vld [vmem:[#allocation5 + $0x50c] sm:$0xf0]  ;;  %1598 = vmatpush.bf16.msrb.mxu1 %v3473_v49  ;;  %v3313_v16 = vor.u32 %v4185_v63, %v3312_v61  ;;  %v2796_v25 = vld [vmem:[#allocation2 + $0x18] sm:$0xf]  ;;  %v4111_v33 = vld [vmem:[#allocation5 + $0x1c4] sm:$0xf]  ;;  %v4672_v42 = vor.u32 %v4050_v29, %v2790_v30 }
  0x57   :  { %v4249_v6 = vld [vmem:[#allocation5 + $0x60c] sm:$0xf0]  ;;  %v3441_v20 = vor.u32 %v4217_v2, %v3440_v1  ;;  %v3154_v38 = vld [vmem:[#allocation5 + $0x2d0] sm:$0xf0]  ;;  %v4175_v39 = vld [vmem:[#allocation5 + $0x3c4] sm:$0xf]  ;;  %v4670_v41 = vor.u32 %v4054_v28, %v2796_v25  ;;  %v3029_v45 = vor.u32 %v4111_v33, %v3026_v34 }
  0x58   :  { %1612 = vmatpush.bf16.msrb.mxu2 %v3601_v50  ;;  %1626 = vmatpush.bf16.msrb.mxu3 %v2837_v54  ;;  %v3569_v21 = vor.u32 %v4249_v6, %v3568_v5  ;;  %v3282_v40 = vld [vmem:[#allocation5 + $0x3d0] sm:$0xf0]  ;;  %v4207_v43 = vld [vmem:[#allocation5 + $0x4c4] sm:$0xf]  ;;  %v3157_v46 = vor.u32 %v4143_v35, %v3154_v38 }
  0x59   :  { %1585 = vmatpush.bf16.msrb.mxu0 %v3329_v62  ;;  %v3410_v44 = vld [vmem:[#allocation5 + $0x4d0] sm:$0xf0]  ;;  %v3285_v47 = vor.u32 %v4175_v39, %v3282_v40  ;;  %v4107_v48 = vld [vmem:[#allocation5 + $0x1a4] sm:$0xf] }
  0x5a   :  { %1599 = vmatpush.bf16.msrb.mxu1 %v3457_v3  ;;  %v3010_v49 = vld [vmem:[#allocation5 + $0x1b0] sm:$0xf0]  ;;  %v4139_v50 = vld [vmem:[#allocation5 + $0x2a4] sm:$0xf]  ;;  %v3413_v51 = vor.u32 %v4207_v43, %v3410_v44 }
  0x5b   :  { %v3138_v52 = vld [vmem:[#allocation5 + $0x2b0] sm:$0xf0]  ;;  %v4171_v53 = vld [vmem:[#allocation5 + $0x3a4] sm:$0xf]  ;;  %v3013_v58 = vor.u32 %v4107_v48, %v3010_v49 }
  0x5c   :  { %1613 = vmatpush.bf16.msrb.mxu2 %v3585_v4  ;;  %1627 = vmatpush.bf16.msrb.mxu3 %v2821_v8  ;;  %v3266_v54 = vld [vmem:[#allocation5 + $0x3b0] sm:$0xf0]  ;;  %v4203_v55 = vld [vmem:[#allocation5 + $0x4a4] sm:$0xf]  ;;  %v3141_v59 = vor.u32 %v4139_v50, %v3138_v52 }
  0x5d   :  { %1586 = vmatpush.bf16.msrb.mxu0 %v3313_v16  ;;  %v3394_v56 = vld [vmem:[#allocation5 + $0x4b0] sm:$0xf0]  ;;  %v3269_v60 = vor.u32 %v4171_v53, %v3266_v54  ;;  %v4103_v61 = vld [vmem:[#allocation5 + $0x184] sm:$0xf] }
  0x5e   :  { %1600 = vmatpush.bf16.msrb.mxu1 %v3441_v20  ;;  %v2994_v62 = vld [vmem:[#allocation5 + $0x190] sm:$0xf0]  ;;  %v4135_v63 = vld [vmem:[#allocation5 + $0x284] sm:$0xf]  ;;  %v3397_v1 = vor.u32 %v4203_v55, %v3394_v56 }
  0x5f   :  { %v3122_v2 = vld [vmem:[#allocation5 + $0x290] sm:$0xf0]  ;;  %v4167_v3 = vld [vmem:[#allocation5 + $0x384] sm:$0xf]  ;;  %v2997_v7 = vor.u32 %v4103_v61, %v2994_v62 }
  0x60   :  { %1614 = vmatpush.bf16.msrb.mxu2 %v3569_v21  ;;  %1628 = vmatpush.bf16.msrb.mxu3 %v2805_v26  ;;  %v3250_v4 = vld [vmem:[#allocation5 + $0x390] sm:$0xf0]  ;;  %v4199_v5 = vld [vmem:[#allocation5 + $0x484] sm:$0xf]  ;;  %v3125_v8 = vor.u32 %v4135_v63, %v3122_v2 }
  0x61   :  { %1635 = vmatpush.bf16.msra.mxu0 %v3045_v27  ;;  %1601 = vmatmul.bf16.vlgmr.msrb.gmra.mxu1 %v4672_v42  ;;  %v3378_v6 = vld [vmem:[#allocation5 + $0x490] sm:$0xf0]  ;;  %v3253_v9 = vor.u32 %v4167_v3, %v3250_v4  ;;  %v4099_v10 = vld [vmem:[#allocation5 + $0x164] sm:$0xf]  ;;  %v2920_v3 = vld [vmem:[#allocation5 + $0xe8] sm:$0xf] }
  0x62   :  { %1649 = vmatpush.bf16.msra.mxu1 %v3173_v31  ;;  %1587 = vmatmul.bf16.vlgmr.msrb.gmra.mxu0 %v4668_v37  ;;  %v2978_v12 = vld [vmem:[#allocation5 + $0x170] sm:$0xf0]  ;;  %v4131_v13 = vld [vmem:[#allocation5 + $0x264] sm:$0xf]  ;;  %v3381_v14 = vor.u32 %v4199_v5, %v3378_v6  ;;  %v4086_v4 = vld [vmem:[#allocation5 + $0xf4] sm:$0xf0] }
  0x63   :  { %1615 = vmatmul.bf16.vlgmr.msrb.gmra.mxu2 %v4670_v41  ;;  %1629 = vmatmul.bf16.vlgmr.msrb.gmra.mxu3 %v4656_v57  ;;  %v3106_v15 = vld [vmem:[#allocation5 + $0x270] sm:$0xf0]  ;;  %v4163_v16 = vld [vmem:[#allocation5 + $0x364] sm:$0xf]  ;;  %v2981_v20 = vor.u32 %v4099_v10, %v2978_v12 }
  0x64   :  { %1663 = vmatpush.bf16.msra.mxu2 %v3301_v32  ;;  %1677 = vmatpush.bf16.msra.mxu3 %v3429_v36  ;;  %v3234_v17 = vld [vmem:[#allocation5 + $0x370] sm:$0xf0]  ;;  %v4195_v18 = vld [vmem:[#allocation5 + $0x464] sm:$0xf]  ;;  %v3109_v21 = vor.u32 %v4131_v13, %v3106_v15  ;;  %v2921_v13 = vor.u32 %v4086_v4, %v2920_v3 }
  0x65   :  { %1636 = vmatpush.bf16.msra.mxu0 %v3029_v45  ;;  %v3362_v19 = vld [vmem:[#allocation5 + $0x470] sm:$0xf0]  ;;  %v3237_v22 = vor.u32 %v4163_v16, %v3234_v17  ;;  %v4095_v24 = vld [vmem:[#allocation5 + $0x144] sm:$0xf] }
  0x66   :  { %1650 = vmatpush.bf16.msra.mxu1 %v3157_v46  ;;  %v2962_v25 = vld [vmem:[#allocation5 + $0x150] sm:$0xf0]  ;;  %v4127_v26 = vld [vmem:[#allocation5 + $0x244] sm:$0xf]  ;;  %v3365_v27 = vor.u32 %v4195_v18, %v3362_v19  ;;  %v2904_v19 = vld [vmem:[#allocation5 + $0xc8] sm:$0xf] }
  0x67   :  { %v3090_v28 = vld [vmem:[#allocation5 + $0x250] sm:$0xf0]  ;;  %v4159_v29 = vld [vmem:[#allocation5 + $0x344] sm:$0xf]  ;;  %v2965_v33 = vor.u32 %v4095_v24, %v2962_v25 }
  0x68   :  { %1664 = vmatpush.bf16.msra.mxu2 %v3285_v47  ;;  %1678 = vmatpush.bf16.msra.mxu3 %v3413_v51  ;;  %v3218_v30 = vld [vmem:[#allocation5 + $0x350] sm:$0xf0]  ;;  %v4191_v31 = vld [vmem:[#allocation5 + $0x444] sm:$0xf]  ;;  %v3093_v34 = vor.u32 %v4127_v26, %v3090_v28 }
  0x69   :  { %1637 = vmatpush.bf16.msra.mxu0 %v3013_v58  ;;  %v3346_v32 = vld [vmem:[#allocation5 + $0x450] sm:$0xf0]  ;;  %v3221_v35 = vor.u32 %v4159_v29, %v3218_v30  ;;  %v4091_v36 = vld [vmem:[#allocation5 + $0x124] sm:$0xf] }
  0x6a   :  { %1651 = vmatpush.bf16.msra.mxu1 %v3141_v59  ;;  %v2946_v38 = vld [vmem:[#allocation5 + $0x130] sm:$0xf0]  ;;  %v4123_v39 = vld [vmem:[#allocation5 + $0x224] sm:$0xf]  ;;  %v3349_v40 = vor.u32 %v4191_v31, %v3346_v32  ;;  %v2888_v32 = vld [vmem:[#allocation5 + $0xa8] sm:$0xf] }
  0x6b   :  { %v3074_v43 = vld [vmem:[#allocation5 + $0x230] sm:$0xf0]  ;;  %v4155_v44 = vld [vmem:[#allocation5 + $0x324] sm:$0xf]  ;;  %v2949_v48 = vor.u32 %v4091_v36, %v2946_v38 }
  0x6c   :  { %1665 = vmatpush.bf16.msra.mxu2 %v3269_v60  ;;  %1679 = vmatpush.bf16.msra.mxu3 %v3397_v1  ;;  %v3202_v45 = vld [vmem:[#allocation5 + $0x330] sm:$0xf0]  ;;  %v4187_v46 = vld [vmem:[#allocation5 + $0x424] sm:$0xf]  ;;  %v3077_v51 = vor.u32 %v4123_v39, %v3074_v43 }
  0x6d   :  { %1638 = vmatpush.bf16.msra.mxu0 %v2997_v7  ;;  %v3330_v47 = vld [vmem:[#allocation5 + $0x430] sm:$0xf0]  ;;  %v4087_v49 = vld [vmem:[#allocation5 + $0x104] sm:$0xf]  ;;  %v3205_v52 = vor.u32 %v4155_v44, %v3202_v45  ;;  %v3048_v7 = vld [vmem:[#allocation5 + $0x1e8] sm:$0xf] }
  0x6e   :  { %1652 = vmatpush.bf16.msra.mxu1 %v3125_v8  ;;  %v2930_v50 = vld [vmem:[#allocation5 + $0x110] sm:$0xf0]  ;;  %v4119_v53 = vld [vmem:[#allocation5 + $0x204] sm:$0xf]  ;;  %v3333_v56 = vor.u32 %v4187_v46, %v3330_v47  ;;  %v4118_v8 = vld [vmem:[#allocation5 + $0x1f4] sm:$0xf0] }
  0x6f   :  { %v3058_v54 = vld [vmem:[#allocation5 + $0x210] sm:$0xf0]  ;;  %v4151_v55 = vld [vmem:[#allocation5 + $0x304] sm:$0xf]  ;;  %v2933_v1 = vor.u32 %v4087_v49, %v2930_v50  ;;  %v3049_v17 = vor.u32 %v4118_v8, %v3048_v7  ;;  %v2872_v47 = vld [vmem:[#allocation5 + $0x88] sm:$0xf] }
  0x70   :  { %1666 = vmatpush.bf16.msra.mxu2 %v3253_v9  ;;  %1680 = vmatpush.bf16.msra.mxu3 %v3381_v14  ;;  %v3186_v58 = vld [vmem:[#allocation5 + $0x310] sm:$0xf0]  ;;  %v4183_v59 = vld [vmem:[#allocation5 + $0x404] sm:$0xf]  ;;  %v3061_v5 = vor.u32 %v4119_v53, %v3058_v54  ;;  %v3000_v49 = vld [vmem:[#allocation5 + $0x188] sm:$0xf] }
  0x71   :  { %1639 = vmatpush.bf16.msra.mxu0 %v2981_v20  ;;  %v3314_v60 = vld [vmem:[#allocation5 + $0x410] sm:$0xf0]  ;;  %v4243_v61 = vld [vmem:[#allocation5 + $0x5e4] sm:$0xf]  ;;  %v3189_v6 = vor.u32 %v4151_v55, %v3186_v58  ;;  %v4082_v20 = vld [vmem:[#allocation5 + $0xd4] sm:$0xf0] }
  0x72   :  { %1653 = vmatpush.bf16.msra.mxu1 %v3109_v21  ;;  %v3554_v62 = vld [vmem:[#allocation5 + $0x5f0] sm:$0xf0]  ;;  %v4275_v63 = vld [vmem:[#allocation5 + $0x6e4] sm:$0xf]  ;;  %v3317_v9 = vor.u32 %v4183_v59, %v3314_v60  ;;  %v3032_v21 = vld [vmem:[#allocation5 + $0x1c8] sm:$0xf]  ;;  %v2905_v26 = vor.u32 %v4082_v20, %v2904_v19 }
  0x73   :  { %v3682_v2 = vld [vmem:[#allocation5 + $0x6f0] sm:$0xf0]  ;;  %v3557_v10 = vor.u32 %v4243_v61, %v3554_v62  ;;  %v4239_v14 = vld [vmem:[#allocation5 + $0x5c4] sm:$0xf]  ;;  %v4106_v50 = vld [vmem:[#allocation5 + $0x194] sm:$0xf0] }
  0x74   :  { %1667 = vmatpush.bf16.msra.mxu2 %v3237_v22  ;;  %1681 = vmatpush.bf16.msra.mxu3 %v3365_v27  ;;  %v3685_v12 = vor.u32 %v4275_v63, %v3682_v2  ;;  %v3538_v15 = vld [vmem:[#allocation5 + $0x5d0] sm:$0xf0]  ;;  %v4271_v16 = vld [vmem:[#allocation5 + $0x6c4] sm:$0xf]  ;;  %v4114_v22 = vld [vmem:[#allocation5 + $0x1d4] sm:$0xf0]  ;;  %v3001_v58 = vor.u32 %v4106_v50, %v3000_v49 }
  0x75   :  { %1640 = vmatpush.bf16.msra.mxu0 %v2965_v33  ;;  %v3666_v18 = vld [vmem:[#allocation5 + $0x6d0] sm:$0xf0]  ;;  %v3541_v24 = vor.u32 %v4239_v14, %v3538_v15  ;;  %v4235_v27 = vld [vmem:[#allocation5 + $0x5a4] sm:$0xf]  ;;  %v3033_v30 = vor.u32 %v4114_v22, %v3032_v21  ;;  %v4078_v33 = vld [vmem:[#allocation5 + $0xb4] sm:$0xf0] }
  0x76   :  { %1654 = vmatpush.bf16.msra.mxu1 %v3093_v34  ;;  %v3669_v25 = vor.u32 %v4271_v16, %v3666_v18  ;;  %v3522_v28 = vld [vmem:[#allocation5 + $0x5b0] sm:$0xf0]  ;;  %v4267_v29 = vld [vmem:[#allocation5 + $0x6a4] sm:$0xf]  ;;  %v3016_v34 = vld [vmem:[#allocation5 + $0x1a8] sm:$0xf]  ;;  %v2889_v39 = vor.u32 %v4078_v33, %v2888_v32 }
  0x77   :  { %v3650_v31 = vld [vmem:[#allocation5 + $0x6b0] sm:$0xf0]  ;;  %v3525_v36 = vor.u32 %v4235_v27, %v3522_v28  ;;  %v4263_v44 = vld [vmem:[#allocation5 + $0x684] sm:$0xf]  ;;  %v2856_v60 = vld [vmem:[#allocation5 + $0x68] sm:$0xf] }
  0x78   :  { %1668 = vmatpush.bf16.msra.mxu2 %v3221_v35  ;;  %1682 = vmatpush.bf16.msra.mxu3 %v3349_v40  ;;  %v4110_v35 = vld [vmem:[#allocation5 + $0x1b4] sm:$0xf0]  ;;  %v3653_v38 = vor.u32 %v4267_v29, %v3650_v31  ;;  %v4231_v40 = vld [vmem:[#allocation5 + $0x584] sm:$0xf]  ;;  %v3506_v43 = vld [vmem:[#allocation5 + $0x590] sm:$0xf0] }
  0x79   :  { %1641 = vmatpush.bf16.msra.mxu0 %v2949_v48  ;;  %v3017_v45 = vor.u32 %v4110_v35, %v3016_v34  ;;  %v3634_v46 = vld [vmem:[#allocation5 + $0x690] sm:$0xf0]  ;;  %v4074_v48 = vld [vmem:[#allocation5 + $0x94] sm:$0xf0]  ;;  %v4227_v54 = vld [vmem:[#allocation5 + $0x564] sm:$0xf] }
  0x7a   :  { %1655 = vmatpush.bf16.msra.mxu1 %v3077_v51  ;;  %v3509_v51 = vor.u32 %v4231_v40, %v3506_v43  ;;  %v2873_v53 = vor.u32 %v4074_v48, %v2872_v47  ;;  %v3490_v55 = vld [vmem:[#allocation5 + $0x570] sm:$0xf0]  ;;  %v4070_v61 = vld [vmem:[#allocation5 + $0x74] sm:$0xf0]  ;;  %v2984_v62 = vld [vmem:[#allocation5 + $0x168] sm:$0xf] }
  0x7b   :  { %v3618_v59 = vld [vmem:[#allocation5 + $0x670] sm:$0xf0]  ;;  %v4102_v63 = vld [vmem:[#allocation5 + $0x174] sm:$0xf0]  ;;  %v2857_v3 = vor.u32 %v4070_v61, %v2856_v60  ;;  %v4223_v4 = vld [vmem:[#allocation5 + $0x544] sm:$0xf] }
  0x7c   :  { %1669 = vmatpush.bf16.msra.mxu2 %v3205_v52  ;;  %1683 = vmatpush.bf16.msra.mxu3 %v3333_v56  ;;  %v3637_v52 = vor.u32 %v4263_v44, %v3634_v46  ;;  %v4259_v56 = vld [vmem:[#allocation5 + $0x664] sm:$0xf]  ;;  %v2985_v7 = vor.u32 %v4102_v63, %v2984_v62  ;;  %v3602_v8 = vld [vmem:[#allocation5 + $0x650] sm:$0xf0]  ;;  %v2824_v22 = vld [vmem:[#allocation5 + $0x28] sm:$0xf] }
  0x7d   :  { %1642 = vmatpush.bf16.msra.mxu0 %v2933_v1  ;;  %v3493_v1 = vor.u32 %v4227_v54, %v3490_v55  ;;  %v3621_v2 = vor.u32 %v4259_v56, %v3618_v59  ;;  %v3458_v18 = vld [vmem:[#allocation5 + $0x530] sm:$0xf0]  ;;  %v4251_v19 = vld [vmem:[#allocation5 + $0x624] sm:$0xf]  ;;  %v2808_v34 = vld [vmem:[#allocation5 + $0x8] sm:$0xf] }
  0x7e   :  { %1656 = vmatpush.bf16.msra.mxu1 %v3061_v5  ;;  %v3474_v5 = vld [vmem:[#allocation5 + $0x550] sm:$0xf0]  ;;  %v4215_v28 = vld [vmem:[#allocation5 + $0x504] sm:$0xf]  ;;  %v3176_v40 = vld [vmem:[#allocation5 + $0x2e8] sm:$0xf] }
  0x7f   :  { %v3477_v14 = vor.u32 %v4223_v4, %v3474_v5  ;;  %v3586_v21 = vld [vmem:[#allocation5 + $0x630] sm:$0xf0]  ;;  %v4247_v32 = vld [vmem:[#allocation5 + $0x604] sm:$0xf]  ;;  %v4150_v43 = vld [vmem:[#allocation5 + $0x2f4] sm:$0xf0] }
  0x80   :  { %1670 = vmatpush.bf16.msra.mxu2 %v3189_v6  ;;  %1684 = vmatpush.bf16.msra.mxu3 %v3317_v9  ;;  %v4255_v6 = vld [vmem:[#allocation5 + $0x644] sm:$0xf]  ;;  %v2840_v9 = vld [vmem:[#allocation5 + $0x48] sm:$0xf]  ;;  %v3442_v29 = vld [vmem:[#allocation5 + $0x510] sm:$0xf0]  ;;  %v3177_v54 = vor.u32 %v4150_v43, %v3176_v40 }
  0x81   :  { %1691 = vmatpush.bf16.msrb.mxu0 %v3557_v10  ;;  %1657 = vmatmul.bf16.vlgmr.msra.gmra.mxu1 %v4658_v0  ;;  %v4066_v10 = vld [vmem:[#allocation5 + $0x54] sm:$0xf0]  ;;  %v3605_v15 = vor.u32 %v4255_v6, %v3602_v8  ;;  %v3570_v33 = vld [vmem:[#allocation5 + $0x610] sm:$0xf0]  ;;  %v3304_v44 = vld [vmem:[#allocation5 + $0x3e8] sm:$0xf] }
  0x82   :  { %1705 = vmatpush.bf16.msrb.mxu1 %v3685_v12  ;;  %1643 = vmatmul.bf16.vlgmr.msra.gmra.mxu0 %v4662_v11  ;;  %v2968_v12 = vld [vmem:[#allocation5 + $0x148] sm:$0xf]  ;;  %v2841_v16 = vor.u32 %v4066_v10, %v2840_v9  ;;  %v4182_v46 = vld [vmem:[#allocation5 + $0x3f4] sm:$0xf0]  ;;  %v3573_v49 = vor.u32 %v4247_v32, %v3570_v33 }
  0x83   :  { %1671 = vmatmul.bf16.vlgmr.msra.gmra.mxu2 %v4665_v23  ;;  %1685 = vmatmul.bf16.vlgmr.msra.gmra.mxu3 %v4668_v37  ;;  %v3432_v47 = vld [vmem:[#allocation5 + $0x4e8] sm:$0xf]  ;;  %v4214_v48 = vld [vmem:[#allocation5 + $0x4f4] sm:$0xf0]  ;;  %v3305_v55 = vor.u32 %v4182_v46, %v3304_v44 }
  0x84   :  { %1719 = vmatpush.bf16.msrb.mxu2 %v2921_v13  ;;  %1733 = vmatpush.bf16.msrb.mxu3 %v3049_v17  ;;  %v4098_v13 = vld [vmem:[#allocation5 + $0x154] sm:$0xf0]  ;;  %v4219_v17 = vld [vmem:[#allocation5 + $0x524] sm:$0xf]  ;;  %v3433_v56 = vor.u32 %v4214_v48, %v3432_v47  ;;  %v3288_v60 = vld [vmem:[#allocation5 + $0x3c8] sm:$0xf] }
  0x85   :  { %1692 = vmatpush.bf16.msrb.mxu0 %v3541_v24  ;;  %v2969_v20 = vor.u32 %v4098_v13, %v2968_v12  ;;  %v4062_v24 = vld [vmem:[#allocation5 + $0x34] sm:$0xf0]  ;;  %v3461_v27 = vor.u32 %v4219_v17, %v3458_v18  ;;  %v3416_v63 = vld [vmem:[#allocation5 + $0x4c8] sm:$0xf] }
  0x86   :  { %1706 = vmatpush.bf16.msrb.mxu1 %v3669_v25  ;;  %v2952_v25 = vld [vmem:[#allocation5 + $0x128] sm:$0xf]  ;;  %v2825_v31 = vor.u32 %v4062_v24, %v2824_v22  ;;  %v4146_v59 = vld [vmem:[#allocation5 + $0x2d4] sm:$0xf0] }
  0x87   :  { %v4178_v62 = vld [vmem:[#allocation5 + $0x3d4] sm:$0xf0]  ;;  %v3272_v9 = vld [vmem:[#allocation5 + $0x3a8] sm:$0xf] }
  0x88   :  { %1720 = vmatpush.bf16.msrb.mxu2 %v2905_v26  ;;  %1734 = vmatpush.bf16.msrb.mxu3 %v3033_v30  ;;  %v4094_v26 = vld [vmem:[#allocation5 + $0x134] sm:$0xf0]  ;;  %v3589_v30 = vor.u32 %v4251_v19, %v3586_v21  ;;  %v3289_v5 = vor.u32 %v4178_v62, %v3288_v60  ;;  %v3400_v13 = vld [vmem:[#allocation5 + $0x4a8] sm:$0xf] }
  0x89   :  { %1693 = vmatpush.bf16.msrb.mxu0 %v3525_v36  ;;  %v2953_v35 = vor.u32 %v4094_v26, %v2952_v25  ;;  %v4058_v36 = vld [vmem:[#allocation5 + $0x14] sm:$0xf0]  ;;  %v3256_v22 = vld [vmem:[#allocation5 + $0x388] sm:$0xf] }
  0x8a   :  { %1707 = vmatpush.bf16.msrb.mxu1 %v3653_v38  ;;  %v2936_v38 = vld [vmem:[#allocation5 + $0x108] sm:$0xf]  ;;  %v2809_v50 = vor.u32 %v4058_v36, %v2808_v34  ;;  %v4142_v8 = vld [vmem:[#allocation5 + $0x2b4] sm:$0xf0] }
  0x8b   :  { %v4174_v12 = vld [vmem:[#allocation5 + $0x3b4] sm:$0xf0]  ;;  %v3384_v26 = vld [vmem:[#allocation5 + $0x488] sm:$0xf] }
  0x8c   :  { %1721 = vmatpush.bf16.msrb.mxu2 %v2889_v39  ;;  %1735 = vmatpush.bf16.msrb.mxu3 %v3017_v45  ;;  %v4090_v39 = vld [vmem:[#allocation5 + $0x114] sm:$0xf0]  ;;  %v3445_v45 = vor.u32 %v4215_v28, %v3442_v29  ;;  %v3273_v18 = vor.u32 %v4174_v12, %v3272_v9  ;;  %v3512_v28 = vld [vmem:[#allocation5 + $0x588] sm:$0xf] }
  0x8d   :  { %1694 = vmatpush.bf16.msrb.mxu0 %v3509_v51  ;;  %v3560_v51 = vld [vmem:[#allocation5 + $0x5e8] sm:$0xf]  ;;  %v4138_v21 = vld [vmem:[#allocation5 + $0x294] sm:$0xf0] }
  0x8e   :  { %1708 = vmatpush.bf16.msrb.mxu1 %v3637_v52  ;;  %v4246_v52 = vld [vmem:[#allocation5 + $0x5f4] sm:$0xf0]  ;;  %v3112_v33 = vld [vmem:[#allocation5 + $0x268] sm:$0xf] }
  0x8f   :  { %v3561_v61 = vor.u32 %v4246_v52, %v3560_v51  ;;  %v4170_v25 = vld [vmem:[#allocation5 + $0x394] sm:$0xf0]  ;;  %v3496_v43 = vld [vmem:[#allocation5 + $0x568] sm:$0xf] }
  0x90   :  { %1722 = vmatpush.bf16.msrb.mxu2 %v2873_v53  ;;  %1736 = vmatpush.bf16.msrb.mxu3 %v3001_v58  ;;  %v2937_v53 = vor.u32 %v4090_v39, %v2936_v38  ;;  %v3160_v58 = vld [vmem:[#allocation5 + $0x2c8] sm:$0xf]  ;;  %v4234_v29 = vld [vmem:[#allocation5 + $0x594] sm:$0xf0] }
  0x91   :  { %1695 = vmatpush.bf16.msrb.mxu0 %v3493_v1  ;;  %v4210_v1 = vld [vmem:[#allocation5 + $0x4d4] sm:$0xf0]  ;;  %v3161_v4 = vor.u32 %v4146_v59, %v3160_v58  ;;  %v3513_v36 = vor.u32 %v4234_v29, %v3512_v28  ;;  %v3368_v39 = vld [vmem:[#allocation5 + $0x468] sm:$0xf] }
  0x92   :  { %1709 = vmatpush.bf16.msrb.mxu1 %v3621_v2  ;;  %v3544_v2 = vld [vmem:[#allocation5 + $0x5c8] sm:$0xf]  ;;  %v3417_v6 = vor.u32 %v4210_v1, %v3416_v63  ;;  %v4134_v34 = vld [vmem:[#allocation5 + $0x274] sm:$0xf0] }
  0x93   :  { %v4166_v38 = vld [vmem:[#allocation5 + $0x374] sm:$0xf0]  ;;  %v3096_v48 = vld [vmem:[#allocation5 + $0x248] sm:$0xf] }
  0x94   :  { %1723 = vmatpush.bf16.msrb.mxu2 %v2857_v3  ;;  %1737 = vmatpush.bf16.msrb.mxu3 %v2985_v7  ;;  %v4242_v3 = vld [vmem:[#allocation5 + $0x5d4] sm:$0xf0]  ;;  %v3144_v7 = vld [vmem:[#allocation5 + $0x2a8] sm:$0xf] }
  0x95   :  { %1696 = vmatpush.bf16.msrb.mxu0 %v3477_v14  ;;  %v3545_v10 = vor.u32 %v4242_v3, %v3544_v2  ;;  %v4206_v14 = vld [vmem:[#allocation5 + $0x4b4] sm:$0xf0]  ;;  %v3145_v17 = vor.u32 %v4142_v8, %v3144_v7  ;;  %v3208_v63 = vld [vmem:[#allocation5 + $0x328] sm:$0xf] }
  0x96   :  { %1710 = vmatpush.bf16.msrb.mxu1 %v3605_v15  ;;  %v3528_v15 = vld [vmem:[#allocation5 + $0x5a8] sm:$0xf]  ;;  %v3401_v19 = vor.u32 %v4206_v14, %v3400_v13  ;;  %v4198_v40 = vld [vmem:[#allocation5 + $0x474] sm:$0xf0] }
  0x97   :  { %v4230_v44 = vld [vmem:[#allocation5 + $0x574] sm:$0xf0]  ;;  %v3369_v47 = vor.u32 %v4198_v40, %v3368_v39  ;;  %v3336_v3 = vld [vmem:[#allocation5 + $0x428] sm:$0xf]  ;;  %v4080_v39 = vld [vmem:[#allocation5 + $0xcc] sm:$0xf] }
  0x98   :  { %1724 = vmatpush.bf16.msrb.mxu2 %v2841_v16  ;;  %1738 = vmatpush.bf16.msrb.mxu3 %v2969_v20  ;;  %v4238_v16 = vld [vmem:[#allocation5 + $0x5b4] sm:$0xf0]  ;;  %v3128_v20 = vld [vmem:[#allocation5 + $0x288] sm:$0xf]  ;;  %v3497_v51 = vor.u32 %v4230_v44, %v3496_v43  ;;  %v2906_v43 = vld [vmem:[#allocation5 + $0xd8] sm:$0xf0] }
  0x99   :  { %1697 = vmatpush.bf16.msrb.mxu0 %v3461_v27  ;;  %v3529_v24 = vor.u32 %v4238_v16, %v3528_v15  ;;  %v4202_v27 = vld [vmem:[#allocation5 + $0x494] sm:$0xf0]  ;;  %v3064_v8 = vld [vmem:[#allocation5 + $0x208] sm:$0xf]  ;;  %v4112_v44 = vld [vmem:[#allocation5 + $0x1cc] sm:$0xf] }
  0x9a   :  { %1711 = vmatpush.bf16.msrb.mxu1 %v3589_v30  ;;  %v3129_v30 = vor.u32 %v4138_v21, %v3128_v20  ;;  %v3385_v32 = vor.u32 %v4202_v27, %v3384_v26  ;;  %v4162_v52 = vld [vmem:[#allocation5 + $0x354] sm:$0xf0]  ;;  %v3192_v13 = vld [vmem:[#allocation5 + $0x308] sm:$0xf]  ;;  %v4116_v26 = vld [vmem:[#allocation5 + $0x1ec] sm:$0xf] }
  0x9b   :  { %v4126_v62 = vld [vmem:[#allocation5 + $0x234] sm:$0xf0]  ;;  %v3320_v15 = vld [vmem:[#allocation5 + $0x408] sm:$0xf]  ;;  %v3050_v27 = vld [vmem:[#allocation5 + $0x1f8] sm:$0xf0] }
  0x9c   :  { %1725 = vmatpush.bf16.msrb.mxu2 %v2825_v31  ;;  %1739 = vmatpush.bf16.msrb.mxu3 %v2953_v35  ;;  %v3257_v31 = vor.u32 %v4170_v25, %v3256_v22  ;;  %v3240_v35 = vld [vmem:[#allocation5 + $0x368] sm:$0xf]  ;;  %v4158_v2 = vld [vmem:[#allocation5 + $0x334] sm:$0xf0]  ;;  %v4084_v22 = vld [vmem:[#allocation5 + $0xec] sm:$0xf] }
  0x9d   :  { %1698 = vmatpush.bf16.msrb.mxu0 %v3445_v45  ;;  %v3113_v45 = vor.u32 %v4134_v34, %v3112_v33  ;;  %v3241_v46 = vor.u32 %v4166_v38, %v3240_v35  ;;  %v4122_v9 = vld [vmem:[#allocation5 + $0x214] sm:$0xf0]  ;;  %v3688_v20 = vld [vmem:[#allocation5 + $0x6e8] sm:$0xf]  ;;  %v2922_v25 = vld [vmem:[#allocation5 + $0xf8] sm:$0xf0]  ;;  %v3053_v35 = vor.u32 %v4116_v26, %v3050_v27 }
  0x9e   :  { %1712 = vmatpush.bf16.msrb.mxu1 %v3573_v49  ;;  %v4130_v49 = vld [vmem:[#allocation5 + $0x254] sm:$0xf0]  ;;  %v2925_v34 = vor.u32 %v4084_v22, %v2922_v25  ;;  %v3114_v22 = vld [vmem:[#allocation5 + $0x278] sm:$0xf0]  ;;  %v3608_v27 = vld [vmem:[#allocation5 + $0x648] sm:$0xf] }
  0x9f   :  { %v3097_v58 = vor.u32 %v4130_v49, %v3096_v48  ;;  %v4154_v14 = vld [vmem:[#allocation5 + $0x314] sm:$0xf0]  ;;  %v2909_v49 = vor.u32 %v4080_v39, %v2906_v43 }
  0xa0   :  { %1726 = vmatpush.bf16.msrb.mxu2 %v2809_v50  ;;  %1740 = vmatpush.bf16.msrb.mxu3 %v2937_v53  ;;  %v3224_v50 = vld [vmem:[#allocation5 + $0x348] sm:$0xf]  ;;  %v4278_v21 = vld [vmem:[#allocation5 + $0x6f4] sm:$0xf0]  ;;  %v3193_v28 = vor.u32 %v4154_v14, %v3192_v13 }
  0xa1   :  { %1747 = vmatpush.bf16.msra.mxu0 %v3177_v54  ;;  %1713 = vmatmul.bf16.vlgmr.msrb.gmra.mxu1 %v4670_v41  ;;  %v3352_v53 = vld [vmem:[#allocation5 + $0x448] sm:$0xf]  ;;  %v4194_v54 = vld [vmem:[#allocation5 + $0x454] sm:$0xf0]  ;;  %v3225_v59 = vor.u32 %v4162_v52, %v3224_v50  ;;  %v3689_v33 = vor.u32 %v4278_v21, %v3688_v20  ;;  %v2986_v20 = vld [vmem:[#allocation5 + $0x178] sm:$0xf0] }
  0xa2   :  { %1761 = vmatpush.bf16.msra.mxu1 %v3305_v55  ;;  %1699 = vmatmul.bf16.vlgmr.msrb.gmra.mxu0 %v4672_v42  ;;  %v3480_v55 = vld [vmem:[#allocation5 + $0x548] sm:$0xf]  ;;  %v3353_v60 = vor.u32 %v4194_v54, %v3352_v53  ;;  %v4274_v38 = vld [vmem:[#allocation5 + $0x6d4] sm:$0xf0]  ;;  %v4076_v53 = vld [vmem:[#allocation5 + $0xac] sm:$0xf] }
  0xa3   :  { %1727 = vmatmul.bf16.vlgmr.msrb.gmra.mxu2 %v4656_v57  ;;  %1741 = vmatmul.bf16.vlgmr.msrb.gmra.mxu3 %v4662_v11  ;;  %v4270_v52 = vld [vmem:[#allocation5 + $0x6b4] sm:$0xf0]  ;;  %v3624_v14 = vld [vmem:[#allocation5 + $0x668] sm:$0xf]  ;;  %v4132_v21 = vld [vmem:[#allocation5 + $0x26c] sm:$0xf] }
  0xa4   :  { %1775 = vmatpush.bf16.msra.mxu2 %v3433_v56  ;;  %1789 = vmatpush.bf16.msra.mxu3 %v3561_v61  ;;  %v4226_v56 = vld [vmem:[#allocation5 + $0x554] sm:$0xf0]  ;;  %v3080_v61 = vld [vmem:[#allocation5 + $0x228] sm:$0xf] }
  0xa5   :  { %1748 = vmatpush.bf16.msra.mxu0 %v3161_v4  ;;  %v3481_v1 = vor.u32 %v4226_v56, %v3480_v55  ;;  %v4190_v4 = vld [vmem:[#allocation5 + $0x434] sm:$0xf0]  ;;  %v3081_v7 = vor.u32 %v4126_v62, %v3080_v61  ;;  %v2890_v55 = vld [vmem:[#allocation5 + $0xb8] sm:$0xf0]  ;;  %v4108_v56 = vld [vmem:[#allocation5 + $0x1ac] sm:$0xf] }
  0xa6   :  { %1762 = vmatpush.bf16.msra.mxu1 %v3289_v5  ;;  %v3464_v5 = vld [vmem:[#allocation5 + $0x528] sm:$0xf]  ;;  %v3337_v12 = vor.u32 %v4190_v4, %v3336_v3  ;;  %v2893_v62 = vor.u32 %v4076_v53, %v2890_v55  ;;  %v4072_v3 = vld [vmem:[#allocation5 + $0x8c] sm:$0xf]  ;;  %v4254_v43 = vld [vmem:[#allocation5 + $0x634] sm:$0xf0] }
  0xa7   :  { %v4250_v53 = vld [vmem:[#allocation5 + $0x614] sm:$0xf0] }
  0xa8   :  { %1776 = vmatpush.bf16.msra.mxu2 %v3417_v6  ;;  %1790 = vmatpush.bf16.msra.mxu3 %v3545_v10  ;;  %v4222_v6 = vld [vmem:[#allocation5 + $0x534] sm:$0xf0]  ;;  %v3209_v10 = vor.u32 %v4158_v2, %v3208_v63 }
  0xa9   :  { %1749 = vmatpush.bf16.msra.mxu0 %v3145_v17  ;;  %v3465_v16 = vor.u32 %v4222_v6, %v3464_v5  ;;  %v4186_v17 = vld [vmem:[#allocation5 + $0x414] sm:$0xf0]  ;;  %v2874_v5 = vld [vmem:[#allocation5 + $0x98] sm:$0xf0]  ;;  %v4104_v6 = vld [vmem:[#allocation5 + $0x18c] sm:$0xf] }
  0xaa   :  { %1763 = vmatpush.bf16.msra.mxu1 %v3273_v18  ;;  %v3448_v18 = vld [vmem:[#allocation5 + $0x508] sm:$0xf]  ;;  %v3321_v29 = vor.u32 %v4186_v17, %v3320_v15  ;;  %v4266_v2 = vld [vmem:[#allocation5 + $0x694] sm:$0xf0] }
  0xab   :  { %v4262_v15 = vld [vmem:[#allocation5 + $0x674] sm:$0xf0] }
  0xac   :  { %1777 = vmatpush.bf16.msra.mxu2 %v3401_v19  ;;  %1791 = vmatpush.bf16.msra.mxu3 %v3529_v24  ;;  %v4218_v19 = vld [vmem:[#allocation5 + $0x514] sm:$0xf0]  ;;  %v3065_v24 = vor.u32 %v4122_v9, %v3064_v8  ;;  %v4136_v8 = vld [vmem:[#allocation5 + $0x28c] sm:$0xf]  ;;  %v3130_v9 = vld [vmem:[#allocation5 + $0x298] sm:$0xf0] }
  0xad   :  { %1750 = vmatpush.bf16.msra.mxu0 %v3129_v30  ;;  %v4148_v30 = vld [vmem:[#allocation5 + $0x2ec] sm:$0xf]  ;;  %v3133_v17 = vor.u32 %v4136_v8, %v3130_v9 }
  0xae   :  { %1764 = vmatpush.bf16.msra.mxu1 %v3257_v31  ;;  %v3178_v31 = vld [vmem:[#allocation5 + $0x2f8] sm:$0xf0] }
  0xaf   :  { %v3181_v40 = vor.u32 %v4148_v30, %v3178_v31  ;;  %v3117_v30 = vor.u32 %v4132_v21, %v3114_v22  ;;  %v2842_v31 = vld [vmem:[#allocation5 + $0x58] sm:$0xf0]  ;;  %v4240_v22 = vld [vmem:[#allocation5 + $0x5cc] sm:$0xf] }
  0xb0   :  { %1778 = vmatpush.bf16.msra.mxu2 %v3385_v32  ;;  %1792 = vmatpush.bf16.msra.mxu3 %v3513_v36  ;;  %v3449_v32 = vor.u32 %v4218_v19, %v3448_v18  ;;  %v3672_v36 = vld [vmem:[#allocation5 + $0x6c8] sm:$0xf]  ;;  %v2858_v18 = vld [vmem:[#allocation5 + $0x78] sm:$0xf0]  ;;  %v4100_v19 = vld [vmem:[#allocation5 + $0x16c] sm:$0xf] }
  0xb1   :  { %1751 = vmatpush.bf16.msra.mxu0 %v3113_v45  ;;  %v3034_v45 = vld [vmem:[#allocation5 + $0x1d8] sm:$0xf0]  ;;  %v3673_v48 = vor.u32 %v4274_v38, %v3672_v36  ;;  %v2989_v26 = vor.u32 %v4100_v19, %v2986_v20  ;;  %v4208_v19 = vld [vmem:[#allocation5 + $0x4cc] sm:$0xf] }
  0xb2   :  { %1765 = vmatpush.bf16.msra.mxu1 %v3241_v46  ;;  %v4144_v46 = vld [vmem:[#allocation5 + $0x2cc] sm:$0xf]  ;;  %v3037_v50 = vor.u32 %v4112_v44, %v3034_v45  ;;  %v3418_v21 = vld [vmem:[#allocation5 + $0x4d8] sm:$0xf0] }
  0xb3   :  { %v4060_v44 = vld [vmem:[#allocation5 + $0x2c] sm:$0xf] }
  0xb4   :  { %1779 = vmatpush.bf16.msra.mxu2 %v3369_v47  ;;  %1793 = vmatpush.bf16.msra.mxu3 %v3497_v51  ;;  %v3162_v47 = vld [vmem:[#allocation5 + $0x2d8] sm:$0xf0]  ;;  %v3656_v51 = vld [vmem:[#allocation5 + $0x6a8] sm:$0xf] }
  0xb5   :  { %1752 = vmatpush.bf16.msra.mxu0 %v3097_v58  ;;  %v3165_v54 = vor.u32 %v4144_v46, %v3162_v47  ;;  %v3018_v58 = vld [vmem:[#allocation5 + $0x1b8] sm:$0xf0]  ;;  %v3657_v61 = vor.u32 %v4270_v52, %v3656_v51  ;;  %v4092_v47 = vld [vmem:[#allocation5 + $0x12c] sm:$0xf]  ;;  %v3576_v52 = vld [vmem:[#allocation5 + $0x608] sm:$0xf] }
  0xb6   :  { %1766 = vmatpush.bf16.msra.mxu1 %v3225_v59  ;;  %v4140_v59 = vld [vmem:[#allocation5 + $0x2ac] sm:$0xf]  ;;  %v3021_v63 = vor.u32 %v4108_v56, %v3018_v58  ;;  %v2826_v46 = vld [vmem:[#allocation5 + $0x38] sm:$0xf0] }
  0xb7   :  { %v4056_v56 = vld [vmem:[#allocation5 + $0xc] sm:$0xf]  ;;  %v2810_v58 = vld [vmem:[#allocation5 + $0x18] sm:$0xf0] }
  0xb8   :  { %1780 = vmatpush.bf16.msra.mxu2 %v3353_v60  ;;  %1794 = vmatpush.bf16.msra.mxu3 %v3481_v1  ;;  %v3146_v60 = vld [vmem:[#allocation5 + $0x2b8] sm:$0xf0]  ;;  %v3640_v1 = vld [vmem:[#allocation5 + $0x688] sm:$0xf]  ;;  %v2813_v8 = vor.u32 %v4056_v56, %v2810_v58  ;;  %v4196_v58 = vld [vmem:[#allocation5 + $0x46c] sm:$0xf] }
  0xb9   :  { %1753 = vmatpush.bf16.msra.mxu0 %v3081_v7  ;;  %v3149_v4 = vor.u32 %v4140_v59, %v3146_v60  ;;  %v3002_v7 = vld [vmem:[#allocation5 + $0x198] sm:$0xf0]  ;;  %v4088_v59 = vld [vmem:[#allocation5 + $0x10c] sm:$0xf] }
  0xba   :  { %1767 = vmatpush.bf16.msra.mxu1 %v3209_v10  ;;  %v3641_v10 = vor.u32 %v4266_v2, %v3640_v1  ;;  %v3005_v13 = vor.u32 %v4104_v6, %v3002_v7  ;;  %v4180_v1 = vld [vmem:[#allocation5 + $0x3ec] sm:$0xf]  ;;  %v3306_v2 = vld [vmem:[#allocation5 + $0x3f8] sm:$0xf0] }
  0xbb   :  { %v4244_v6 = vld [vmem:[#allocation5 + $0x5ec] sm:$0xf]  ;;  %v3562_v7 = vld [vmem:[#allocation5 + $0x5f8] sm:$0xf0] }
  0xbc   :  { %1781 = vmatpush.bf16.msra.mxu2 %v3337_v12  ;;  %1795 = vmatpush.bf16.msra.mxu3 %v3465_v16  ;;  %v2877_v12 = vor.u32 %v4072_v3, %v2874_v5  ;;  %v4068_v16 = vld [vmem:[#allocation5 + $0x6c] sm:$0xf]  ;;  %v3434_v5 = vld [vmem:[#allocation5 + $0x4f8] sm:$0xf0] }
  0xbd   :  { %1754 = vmatpush.bf16.msra.mxu0 %v3065_v24  ;;  %v3625_v24 = vor.u32 %v4262_v15, %v3624_v14  ;;  %v2861_v25 = vor.u32 %v4068_v16, %v2858_v18  ;;  %v4212_v3 = vld [vmem:[#allocation5 + $0x4ec] sm:$0xf]  ;;  %v3309_v14 = vor.u32 %v4180_v1, %v3306_v2  ;;  %v3565_v16 = vor.u32 %v4244_v6, %v3562_v7  ;;  %v3290_v18 = vld [vmem:[#allocation5 + $0x3d8] sm:$0xf0] }
  0xbe   :  { %1768 = vmatpush.bf16.msra.mxu1 %v3193_v28  ;;  %v4258_v28 = vld [vmem:[#allocation5 + $0x654] sm:$0xf0]  ;;  %v3437_v15 = vor.u32 %v4212_v3, %v3434_v5  ;;  %v3242_v56 = vld [vmem:[#allocation5 + $0x378] sm:$0xf0]  ;;  %v4696_v2 = vpop.f32.mrf.mxu1  ;;  %v4160_v6 = vld [vmem:[#allocation5 + $0x34c] sm:$0xf] }
  0xbf   :  { %v3609_v36 = vor.u32 %v4258_v28, %v3608_v27  ;;  %v3421_v28 = vor.u32 %v4208_v19, %v3418_v21  ;;  %v3626_v1 = vld [vmem:[#allocation5 + $0x678] sm:$0xf0]  ;;  %v4156_v21 = vld [vmem:[#allocation5 + $0x32c] sm:$0xf] }
  0xc0   :  { %1782 = vmatpush.bf16.msra.mxu2 %v3321_v29  ;;  %1796 = vmatpush.bf16.msra.mxu3 %v3449_v32  ;;  %v4064_v29 = vld [vmem:[#allocation5 + $0x4c] sm:$0xf]  ;;  %v3226_v7 = vld [vmem:[#allocation5 + $0x358] sm:$0xf0] }
  0xc1   :  { %1803 = vmatpush.bf16.msrb.mxu0 %v3689_v33  ;;  %1769 = vmatmul.bf16.vlgmr.msra.gmra.mxu1 %v4665_v23  ;;  %v4096_v32 = vld [vmem:[#allocation5 + $0x14c] sm:$0xf]  ;;  %v2970_v33 = vld [vmem:[#allocation5 + $0x158] sm:$0xf0]  ;;  %v2845_v38 = vor.u32 %v4064_v29, %v2842_v31 }
  0xc2   :  { %1817 = vmatpush.bf16.msrb.mxu1 %v2925_v34  ;;  %1755 = vmatmul.bf16.vlgmr.msra.gmra.mxu0 %v4658_v0  ;;  %v4128_v34 = vld [vmem:[#allocation5 + $0x24c] sm:$0xf]  ;;  %v2973_v39 = vor.u32 %v4096_v32, %v2970_v33  ;;  %v3274_v31 = vld [vmem:[#allocation5 + $0x3b8] sm:$0xf0] }
  0xc3   :  { %1783 = vmatmul.bf16.vlgmr.msra.gmra.mxu2 %v4668_v37  ;;  %1797 = vmatmul.bf16.vlgmr.msra.gmra.mxu3 %v4672_v42  ;;  %v4204_v32 = vld [vmem:[#allocation5 + $0x4ac] sm:$0xf] }
  0xc4   :  { %1831 = vmatpush.bf16.msrb.mxu2 %v3053_v35  ;;  %1845 = vmatpush.bf16.msrb.mxu3 %v3181_v40  ;;  %v3098_v35 = vld [vmem:[#allocation5 + $0x258] sm:$0xf0]  ;;  %v3592_v40 = vld [vmem:[#allocation5 + $0x628] sm:$0xf] }
  0xc5   :  { %1804 = vmatpush.bf16.msrb.mxu0 %v3673_v48  ;;  %v3101_v45 = vor.u32 %v4128_v34, %v3098_v35  ;;  %v2954_v48 = vld [vmem:[#allocation5 + $0x138] sm:$0xf0]  ;;  %v3593_v51 = vor.u32 %v4254_v43, %v3592_v40  ;;  %v4236_v35 = vld [vmem:[#allocation5 + $0x5ac] sm:$0xf] }
  0xc6   :  { %1818 = vmatpush.bf16.msrb.mxu1 %v2909_v49  ;;  %v4124_v49 = vld [vmem:[#allocation5 + $0x22c] sm:$0xf]  ;;  %v2957_v55 = vor.u32 %v4092_v47, %v2954_v48  ;;  %v3402_v34 = vld [vmem:[#allocation5 + $0x4b8] sm:$0xf0] }
  0xc7   :  { %v3405_v43 = vor.u32 %v4204_v32, %v3402_v34  ;;  %v4200_v47 = vld [vmem:[#allocation5 + $0x48c] sm:$0xf] }
  0xc8   :  { %1832 = vmatpush.bf16.msrb.mxu2 %v3037_v50  ;;  %1846 = vmatpush.bf16.msrb.mxu3 %v3165_v54  ;;  %v3082_v50 = vld [vmem:[#allocation5 + $0x238] sm:$0xf0]  ;;  %v2829_v54 = vor.u32 %v4060_v44, %v2826_v46  ;;  %v4152_v34 = vld [vmem:[#allocation5 + $0x30c] sm:$0xf] }
  0xc9   :  { %1805 = vmatpush.bf16.msrb.mxu0 %v3657_v61  ;;  %v3085_v60 = vor.u32 %v4124_v49, %v3082_v50  ;;  %v2938_v61 = vld [vmem:[#allocation5 + $0x118] sm:$0xf0]  ;;  %v4232_v50 = vld [vmem:[#allocation5 + $0x58c] sm:$0xf] }
  0xca   :  { %1819 = vmatpush.bf16.msrb.mxu1 %v2893_v62  ;;  %v4120_v62 = vld [vmem:[#allocation5 + $0x20c] sm:$0xf]  ;;  %v2941_v9 = vor.u32 %v4088_v59, %v2938_v61  ;;  %v3258_v46 = vld [vmem:[#allocation5 + $0x398] sm:$0xf0] }
  0xcb   :  { %v3386_v49 = vld [vmem:[#allocation5 + $0x498] sm:$0xf0]  ;;  %v4228_v61 = vld [vmem:[#allocation5 + $0x56c] sm:$0xf] }
  0xcc   :  { %1833 = vmatpush.bf16.msrb.mxu2 %v3021_v63  ;;  %1847 = vmatpush.bf16.msrb.mxu3 %v3149_v4  ;;  %v3066_v63 = vld [vmem:[#allocation5 + $0x218] sm:$0xf0]  ;;  %v3577_v4 = vor.u32 %v4250_v53, %v3576_v52  ;;  %v4694_v53 = vpop.f32.mrf.mxu0 }
  0xcd   :  { %1806 = vmatpush.bf16.msrb.mxu0 %v3641_v10  ;;  %v4276_v10 = vld [vmem:[#allocation5 + $0x6ec] sm:$0xf]  ;;  %v3642_v52 = vld [vmem:[#allocation5 + $0x698] sm:$0xf0] }
  0xce   :  { %1820 = vmatpush.bf16.msrb.mxu1 %v2877_v12  ;;  %v3690_v12 = vld [vmem:[#allocation5 + $0x6f8] sm:$0xf0] }
  0xcf   :  { %v3693_v20 = vor.u32 %v4276_v10, %v3690_v12  ;;  %v3354_v12 = vld [vmem:[#allocation5 + $0x458] sm:$0xf0] }
  0xd0   :  { %1834 = vmatpush.bf16.msrb.mxu2 %v3005_v13  ;;  %1848 = vmatpush.bf16.msrb.mxu3 %v3133_v17  ;;  %v3069_v13 = vor.u32 %v4120_v62, %v3066_v63  ;;  %v4176_v17 = vld [vmem:[#allocation5 + $0x3cc] sm:$0xf]  ;;  %v3498_v62 = vld [vmem:[#allocation5 + $0x578] sm:$0xf0] }
  0xd1   :  { %1807 = vmatpush.bf16.msrb.mxu0 %v3625_v24  ;;  %v3546_v24 = vld [vmem:[#allocation5 + $0x5d8] sm:$0xf0]  ;;  %v3293_v27 = vor.u32 %v4176_v17, %v3290_v18  ;;  %v4260_v63 = vld [vmem:[#allocation5 + $0x66c] sm:$0xf]  ;;  %v3501_v5 = vor.u32 %v4228_v61, %v3498_v62  ;;  %v4700_v17 = vld [vmem:[#allocation7] sm:$0xf]  ;;  %v3229_v18 = vor.u32 %v4160_v6, %v3226_v7 }
  0xd2   :  { %1821 = vmatpush.bf16.msrb.mxu1 %v2861_v25  ;;  %v4272_v25 = vld [vmem:[#allocation5 + $0x6cc] sm:$0xf]  ;;  %v3549_v29 = vor.u32 %v4240_v22, %v3546_v24  ;;  %v3629_v10 = vor.u32 %v4260_v63, %v3626_v1  ;;  %v3210_v22 = vld [vmem:[#allocation5 + $0x338] sm:$0xf0]  ;;  %v359_v32 = vperm.slane %v4700_v17, 0 }
  0xd3   :  { %v4188_v24 = vld [vmem:[#allocation5 + $0x42c] sm:$0xf]  ;;  %v3744_v61 = vld [vmem:[#allocation8 + $0x60] sm:$0xf] }
  0xd4   :  { %1835 = vmatpush.bf16.msrb.mxu2 %v2989_v26  ;;  %1849 = vmatpush.bf16.msrb.mxu3 %v3117_v30  ;;  %v3674_v26 = vld [vmem:[#allocation5 + $0x6d8] sm:$0xf0]  ;;  %v4172_v30 = vld [vmem:[#allocation5 + $0x3ac] sm:$0xf] }
  0xd5   :  { %1808 = vmatpush.bf16.msrb.mxu0 %v3609_v36  ;;  %v3677_v33 = vor.u32 %v4272_v25, %v3674_v26  ;;  %v3530_v36 = vld [vmem:[#allocation5 + $0x5b8] sm:$0xf0]  ;;  %v3277_v40 = vor.u32 %v4172_v30, %v3274_v31  ;;  %v1534_v25 = vpop.f32.mrf.mxu0  ;;  %v4252_v30 = vld [vmem:[#allocation5 + $0x62c] sm:$0xf] }
  0xd6   :  { %1822 = vmatpush.bf16.msrb.mxu1 %v2845_v38  ;;  %v4268_v38 = vld [vmem:[#allocation5 + $0x6ac] sm:$0xf]  ;;  %v3533_v44 = vor.u32 %v4236_v35, %v3530_v36  ;;  %v3594_v31 = vld [vmem:[#allocation5 + $0x638] sm:$0xf0] }
  0xd7   :  { %v4292_v62 = vld [vmem:[#allocation8 + $0x64] sm:$0xf0] }
  0xd8   :  { %1836 = vmatpush.bf16.msrb.mxu2 %v2973_v39  ;;  %1850 = vmatpush.bf16.msrb.mxu3 %v3101_v45  ;;  %v3658_v39 = vld [vmem:[#allocation5 + $0x6b8] sm:$0xf0]  ;;  %v4168_v45 = vld [vmem:[#allocation5 + $0x38c] sm:$0xf]  ;;  %v3745_v7 = vor.u32 %v4292_v62, %v3744_v61  ;;  %v4293_v61 = vld [vmem:[#allocation8 + $0x74] sm:$0xf] }
  0xd9   :  { %1809 = vmatpush.bf16.msrb.mxu0 %v3593_v51  ;;  %v3661_v48 = vor.u32 %v4268_v38, %v3658_v39  ;;  %v4264_v51 = vld [vmem:[#allocation5 + $0x68c] sm:$0xf]  ;;  %v3194_v38 = vld [vmem:[#allocation5 + $0x318] sm:$0xf0] }
  0xda   :  { %1823 = vmatpush.bf16.msrb.mxu1 %v2829_v54  ;;  %v3645_v59 = vor.u32 %v4264_v51, %v3642_v52  ;;  %v4184_v39 = vld [vmem:[#allocation5 + $0x40c] sm:$0xf]  ;;  %v3197_v52 = vor.u32 %v4152_v34, %v3194_v38 }
  0xdc   :  { %1837 = vmatpush.bf16.msrb.mxu2 %v2957_v55  ;;  %1851 = vmatpush.bf16.msrb.mxu3 %v3085_v60  ;;  %v4164_v55 = vld [vmem:[#allocation5 + $0x36c] sm:$0xf]  ;;  %v3370_v60 = vld [vmem:[#allocation5 + $0x478] sm:$0xf0] }
  0xdd   :  { %1810 = vmatpush.bf16.msrb.mxu0 %v3577_v4  ;;  %v3245_v3 = vor.u32 %v4164_v55, %v3242_v56  ;;  %v3373_v4 = vor.u32 %v4196_v58, %v3370_v60  ;;  %v1533_v58 = vadd.f32 %v4694_v53, %v359_v32  ;;  %v3736_v53 = vld [vmem:[#allocation8 + $0x50] sm:$0xf] }
  0xde   :  { %1824 = vmatpush.bf16.msrb.mxu1 %v2813_v8  ;;  %v4192_v8 = vld [vmem:[#allocation5 + $0x44c] sm:$0xf] }
  0xdf   :  { %v3357_v19 = vor.u32 %v4192_v8, %v3354_v12  ;;  %v1588_v1 = vpop.f32.mrf.mxu0  ;;  %v1547_v6 = vadd.f32 %v4696_v2, %v1533_v58  ;;  %v4290_v8 = vld [vmem:[#allocation8 + $0x54] sm:$0xf0] }
  0xe0   :  { %1838 = vmatpush.bf16.msrb.mxu2 %v2941_v9  ;;  %1852 = vmatpush.bf16.msrb.mxu3 %v3069_v13  ;;  %v4698_v9 = vpop.f32.mrf.mxu2  ;;  %v4224_v13 = vld [vmem:[#allocation5 + $0x54c] sm:$0xf] }
  0xe1   :  { %1859 = vmatpush.bf16.msra.mxu0 %v3309_v14  ;;  %1825 = vmatmul.bf16.vlgmr.msrb.gmra.mxu1 %v4656_v57  ;;  %v3389_v57 = vor.u32 %v4200_v47, %v3386_v49  ;;  %v3482_v14 = vld [vmem:[#allocation5 + $0x558] sm:$0xf0]  ;;  %v4248_v47 = vld [vmem:[#allocation5 + $0x60c] sm:$0xf]  ;;  %v1561_v2 = vadd.f32 %v4698_v9, %v1547_v6  ;;  %v3818_v6 = vld [vmem:[#allocation8 + $0xf8] sm:$0xf0] }
  0xe2   :  { %1873 = vmatpush.bf16.msra.mxu1 %v3437_v15  ;;  %1811 = vmatmul.bf16.vlgmr.msrb.gmra.mxu0 %v4670_v41  ;;  %v4256_v15 = vld [vmem:[#allocation5 + $0x64c] sm:$0xf]  ;;  %v3578_v49 = vld [vmem:[#allocation5 + $0x618] sm:$0xf0] }
  0xe3   :  { %1839 = vmatmul.bf16.vlgmr.msrb.gmra.mxu2 %v4662_v11  ;;  %1853 = vmatmul.bf16.vlgmr.msrb.gmra.mxu3 %v4658_v0  ;;  %v3514_v11 = vld [vmem:[#allocation5 + $0x598] sm:$0xf0]  ;;  %v3261_v0 = vor.u32 %v4168_v45, %v3258_v46  ;;  %v4216_v45 = vld [vmem:[#allocation5 + $0x50c] sm:$0xf] }
  0xe4   :  { %1887 = vmatpush.bf16.msra.mxu2 %v3565_v16  ;;  %1901 = vmatpush.bf16.msra.mxu3 %v3693_v20  ;;  %v3517_v54 = vor.u32 %v4232_v50, %v3514_v11  ;;  %v3610_v16 = vld [vmem:[#allocation5 + $0x658] sm:$0xf0]  ;;  %v3485_v20 = vor.u32 %v4224_v13, %v3482_v14  ;;  %v3752_v50 = vld [vmem:[#allocation8 + $0x70] sm:$0xf] }
  0xe5   :  { %1860 = vmatpush.bf16.msra.mxu0 %v3293_v27  ;;  %v3613_v26 = vor.u32 %v4256_v15, %v3610_v16  ;;  %v3338_v27 = vld [vmem:[#allocation5 + $0x438] sm:$0xf0]  ;;  %v3800_v13 = vld [vmem:[#allocation8 + $0xd0] sm:$0xf] }
  0xe6   :  { %1874 = vmatpush.bf16.msra.mxu1 %v3421_v28  ;;  %v4220_v28 = vld [vmem:[#allocation5 + $0x52c] sm:$0xf]  ;;  %v3341_v35 = vor.u32 %v4188_v24, %v3338_v27  ;;  %v3450_v46 = vld [vmem:[#allocation5 + $0x518] sm:$0xf0]  ;;  %v3720_v27 = vld [vmem:[#allocation8 + $0x30] sm:$0xf] }
  0xe7   :  { %v4294_v11 = vld [vmem:[#allocation8 + $0x74] sm:$0xf0]  ;;  %v3453_v56 = vor.u32 %v4216_v45, %v3450_v46  ;;  %v4304_v24 = vld [vmem:[#allocation8 + $0xc4] sm:$0xf0] }
  0xe8   :  { %1888 = vmatpush.bf16.msra.mxu2 %v3549_v29  ;;  %1902 = vmatpush.bf16.msra.mxu3 %v3677_v33  ;;  %v3466_v29 = vld [vmem:[#allocation5 + $0x538] sm:$0xf0]  ;;  %v3213_v33 = vor.u32 %v4156_v21, %v3210_v22  ;;  %v1562_v51 = vpop.f32.mrf.mxu2  ;;  %v3753_v60 = vor.u32 %v4294_v11, %v3752_v50  ;;  %v3792_v22 = vld [vmem:[#allocation8 + $0xc0] sm:$0xf]  ;;  %v360_v11 = vperm.slane %v4700_v17, 1 }
  0xe9   :  { %1861 = vmatpush.bf16.msra.mxu0 %v3277_v40  ;;  %v3469_v36 = vor.u32 %v4220_v28, %v3466_v29  ;;  %v3322_v40 = vld [vmem:[#allocation5 + $0x418] sm:$0xf0]  ;;  %v3784_v29 = vld [vmem:[#allocation8 + $0xb0] sm:$0xf] }
  0xea   :  { %1875 = vmatpush.bf16.msra.mxu1 %v3405_v43  ;;  %v1548_v43 = vpop.f32.mrf.mxu1  ;;  %v3325_v55 = vor.u32 %v4184_v39, %v3322_v40  ;;  %v4306_v14 = vld [vmem:[#allocation8 + $0xd4] sm:$0xf0]  ;;  %v3776_v40 = vld [vmem:[#allocation8 + $0xa0] sm:$0xf] }
  0xeb   :  { %v3801_v21 = vor.u32 %v4306_v14, %v3800_v13  ;;  %v4286_v28 = vld [vmem:[#allocation8 + $0x34] sm:$0xf0]  ;;  %v4291_v14 = vld [vmem:[#allocation8 + $0x64] sm:$0xf] }
  0xec   :  { %1889 = vmatpush.bf16.msra.mxu2 %v3533_v44  ;;  %1903 = vmatpush.bf16.msra.mxu3 %v3661_v48  ;;  %v3597_v44 = vor.u32 %v4252_v30, %v3594_v31  ;;  %v1574_v48 = vpop.f32.mrf.mxu3  ;;  %v4302_v9 = vld [vmem:[#allocation8 + $0xb4] sm:$0xf0]  ;;  %v3721_v34 = vor.u32 %v4286_v28, %v3720_v27 }
  0xed   :  { %1862 = vmatpush.bf16.msra.mxu0 %v3261_v0  ;;  %v3816_v0 = vld [vmem:[#allocation8 + $0xf0] sm:$0xf]  ;;  %v3785_v38 = vor.u32 %v4302_v9, %v3784_v29  ;;  %v3802_v29 = vld [vmem:[#allocation8 + $0xd8] sm:$0xf0] }
  0xee   :  { %1876 = vmatpush.bf16.msra.mxu1 %v3389_v57  ;;  %v4310_v57 = vld [vmem:[#allocation8 + $0xf4] sm:$0xf0] }
  0xef   :  { %v3817_v63 = vor.u32 %v4310_v57, %v3816_v0 }
  0xf0   :  { %1890 = vmatpush.bf16.msra.mxu2 %v3517_v54  ;;  %1904 = vmatpush.bf16.msra.mxu3 %v3645_v59  ;;  %v1535_v54 = vadd.f32 %v1534_v25, %v359_v32  ;;  %v3581_v59 = vor.u32 %v4248_v47, %v3578_v49  ;;  %v1575_v25 = vadd.f32 %v1574_v48, %v1561_v2  ;;  %v3704_v48 = vld [vmem:[#allocation8 + $0x10] sm:$0xf]  ;;  %v4282_v49 = vld [vmem:[#allocation8 + $0x14] sm:$0xf0] }
  0xf1   :  { %1863 = vmatpush.bf16.msra.mxu0 %v3245_v3  ;;  %v3808_v3 = vld [vmem:[#allocation8 + $0xe0] sm:$0xf] }
  0xf2   :  { %1877 = vmatpush.bf16.msra.mxu1 %v3373_v4  ;;  %v4308_v4 = vld [vmem:[#allocation8 + $0xe4] sm:$0xf0]  ;;  %v1602_v12 = vpop.f32.mrf.mxu1  ;;  %v1589_v32 = vadd.f32 %v1588_v1, %v1575_v25  ;;  %v3754_v1 = vld [vmem:[#allocation8 + $0x78] sm:$0xf0] }
  0xf4   :  { %1891 = vmatpush.bf16.msra.mxu2 %v3501_v5  ;;  %1905 = vmatpush.bf16.msra.mxu3 %v3629_v10  ;;  %v1549_v5 = vadd.f32 %v1548_v43, %v1535_v54  ;;  %v3809_v10 = vor.u32 %v4308_v4, %v3808_v3  ;;  %v1576_v16 = vpop.f32.mrf.mxu3  ;;  %v4300_v43 = vld [vmem:[#allocation8 + $0xa4] sm:$0xf0]  ;;  %v1603_v45 = vadd.f32 %v1602_v12, %v1589_v32  ;;  %v3760_v3 = vld [vmem:[#allocation8 + $0x80] sm:$0xf]  ;;  %v4287_v32 = vld [vmem:[#allocation8 + $0x44] sm:$0xf] }
  0xf5   :  { %1864 = vmatpush.bf16.msra.mxu0 %v3229_v18  ;;  %v1616_v18 = vpop.f32.mrf.mxu2  ;;  %v3777_v50 = vor.u32 %v4300_v43, %v3776_v40  ;;  %v4296_v4 = vld [vmem:[#allocation8 + $0x84] sm:$0xf0] }
  0xf6   :  { %1878 = vmatpush.bf16.msra.mxu1 %v3357_v19  ;;  %v1563_v15 = vadd.f32 %v1562_v51, %v1549_v5  ;;  %v3728_v19 = vld [vmem:[#allocation8 + $0x40] sm:$0xf]  ;;  %v3768_v51 = vld [vmem:[#allocation8 + $0x90] sm:$0xf]  ;;  %v1617_v57 = vadd.f32 %v1616_v18, %v1603_v45  ;;  %v4309_v5 = vld [vmem:[#allocation8 + $0xf4] sm:$0xf] }
  0xf7   :  { %v4307_v18 = vld [vmem:[#allocation8 + $0xe4] sm:$0xf]  ;;  %v4285_v45 = vld [vmem:[#allocation8 + $0x34] sm:$0xf] }
  0xf8   :  { %1892 = vmatpush.bf16.msra.mxu2 %v3485_v20  ;;  %1906 = vmatpush.bf16.msra.mxu3 %v3613_v26  ;;  %v4288_v20 = vld [vmem:[#allocation8 + $0x44] sm:$0xf0]  ;;  %vm1915_vm1 = vcmp.gt.f32.partialorder %v1617_v57, 0.0 }
  0xf9   :  { %1865 = vmatpush.bf16.msra.mxu0 %v3213_v33  ;;  %v3729_v26 = vor.u32 %v4288_v20, %v3728_v19 }
  0xfa   :  { %1879 = vmatpush.bf16.msra.mxu1 %v3341_v35  ;;  %v1604_v33 = vpop.f32.mrf.mxu1  ;;  %v3712_v35 = vld [vmem:[#allocation8 + $0x20] sm:$0xf] }
  0xfc   :  { %1893 = vmatpush.bf16.msra.mxu2 %v3469_v36  ;;  %1907 = vmatpush.bf16.msra.mxu3 %v3597_v44  ;;  %v1630_v31 = vpop.f32.mrf.mxu3  ;;  %v4284_v36 = vld [vmem:[#allocation8 + $0x24] sm:$0xf0] }
  0xfd   :  { %1866 = vmatpush.bf16.msra.mxu0 %v3197_v52  ;;  %v1618_v39 = vpop.f32.mrf.mxu2  ;;  %v3713_v46 = vor.u32 %v4284_v36, %v3712_v35  ;;  %v4298_v52 = vld [vmem:[#allocation8 + $0x94] sm:$0xf0]  ;;  %v4303_v35 = vld [vmem:[#allocation8 + $0xc4] sm:$0xf]  ;;  %v3794_v36 = vld [vmem:[#allocation8 + $0xc8] sm:$0xf0] }
  0xfe   :  { %1880 = vmatpush.bf16.msra.mxu1 %v3325_v55  ;;  %v3705_v55 = vor.u32 %v4282_v49, %v3704_v48  ;;  %v3769_v62 = vor.u32 %v4298_v52, %v3768_v51  ;;  %v3872_v51 = vld [vmem:[#allocation8 + $0x160] sm:$0xf]  ;;  %v4324_v52 = vld [vmem:[#allocation8 + $0x164] sm:$0xf0] }
 0x100   :  { %1894 = vmatpush.bf16.msra.mxu2 %v3453_v56  ;;  %1908 = vmatpush.bf16.msra.mxu3 %v3581_v59  ;;  %v3696_v56 = vld [vmem:[#allocation8] sm:$0xf] }
 0x101   :  { %2333 = vmatpush.bf16.msrb.mxu0 %v3753_v60  ;;  %1881 = vmatmul.bf16.vlgmr.msra.gmra.mxu1 %v4668_v37  ;;  %v1577_v37 = vadd.f32 %v1576_v16, %v1563_v15  ;;  %v4280_v60 = vld [vmem:[#allocation8 + $0x4] sm:$0xf0]  ;;  %v3746_v15 = vld [vmem:[#allocation8 + $0x68] sm:$0xf0]  ;;  %v3821_v16 = vor.u32 %v4309_v5, %v3818_v6  ;;  %v3864_v5 = vld [vmem:[#allocation8 + $0x150] sm:$0xf] }
 0x102   :  { %1867 = vmatmul.bf16.vlgmr.msra.gmra.mxu0 %v4665_v23  ;;  %2347 = vmatpush.bf16.msrb.mxu1 %v3817_v63  ;;  %v3737_v23 = vor.u32 %v4290_v8, %v3736_v53  ;;  %v1658_v54 = vpop.f32.mrf.mxu1  ;;  %v1631_v63 = vadd.f32 %v1630_v31, %v360_v11  ;;  %v3697_v53 = vor.u32 %v4280_v60, %v3696_v56  ;;  %v4283_v60 = vld [vmem:[#allocation8 + $0x24] sm:$0xf]  ;;  %v4322_v6 = vld [vmem:[#allocation8 + $0x154] sm:$0xf0] }
 0x103   :  { %1895 = vmatmul.bf16.vlgmr.msra.gmra.mxu2 %v4672_v42  ;;  %1909 = vmatmul.bf16.vlgmr.msra.gmra.mxu3 %v4670_v41  ;;  %v1590_v42 = vpop.f32.mrf.mxu0  ;;  %v3793_v41 = vor.u32 %v4304_v24, %v3792_v22  ;;  %v3757_v8 = vor.u32 %v4293_v61, %v3754_v1  ;;  %v3749_v22 = vor.u32 %v4291_v14, %v3746_v15  ;;  %v3714_v61 = vld [vmem:[#allocation8 + $0x28] sm:$0xf0]  ;;  %v3706_v14 = vld [vmem:[#allocation8 + $0x18] sm:$0xf0] }
 0x104   :  { %v1591_v30 = vadd.f32 %v1590_v42, %v1577_v37  ;;  %v1632_v59 = vpop.f32.mrf.mxu3  ;;  %v4289_v42 = vld [vmem:[#allocation8 + $0x54] sm:$0xf]  ;;  %v3778_v1 = vld [vmem:[#allocation8 + $0xa8] sm:$0xf0] }
 0x105   :  { %2334 = vmatpush.bf16.msrb.mxu0 %v3745_v7  ;;  %v1923_v7 = vmul.f32 0.2, %v1617_v57  ;;  %v1633_v24 = vadd.f32 %v1632_v59, %v360_v11  ;;  %v3797_v11 = vor.u32 %v4303_v35, %v3794_v36  ;;  %v4316_v35 = vld [vmem:[#allocation8 + $0x124] sm:$0xf0] }
 0x106   :  { %2348 = vmatpush.bf16.msrb.mxu1 %v3809_v10  ;;  %v1605_v44 = vadd.f32 %v1604_v33, %v1591_v30  ;;  %v3761_v10 = vor.u32 %v4296_v4, %v3760_v3  ;;  %v1672_v2 = vpop.f32.mrf.mxu2  ;;  %v3730_v33 = vld [vmem:[#allocation8 + $0x48] sm:$0xf0] }
 0x107   :  { %v1931_v19 = vsel %vm1915_vm1, %v1617_v57, %v1923_v7  ;;  %v3786_v57 = vld [vmem:[#allocation8 + $0xb8] sm:$0xf0] }
 0x108   :  { %v1619_v47 = vadd.f32 %v1618_v39, %v1605_v44  ;;  %v4326_v39 = vld [vmem:[#allocation8 + $0x174] sm:$0xf0]  ;;  %v3733_v44 = vor.u32 %v4287_v32, %v3730_v33 }
 0x109   :  { %2335 = vmatpush.bf16.msrb.mxu0 %v3737_v23  ;;  %v3810_v23 = vld [vmem:[#allocation8 + $0xe8] sm:$0xf0] }
 0x10a   :  { %2349 = vmatpush.bf16.msrb.mxu1 %v3801_v21  ;;  %v1927_v58 = vmul.f32 0.2, %v1619_v47  ;;  %vm1919_vm0 = vcmp.gt.f32.partialorder %v1619_v47, 0.0  ;;  %v1660_v25 = vpop.f32.mrf.mxu1  ;;  %v3813_v27 = vor.u32 %v4307_v18, %v3810_v23  ;;  %v4297_v18 = vld [vmem:[#allocation8 + $0x94] sm:$0xf] }
 0x10b   :  { %v1644_v0 = vpop.f32.mrf.mxu0  ;;  %v3770_v23 = vld [vmem:[#allocation8 + $0x98] sm:$0xf0] }
 0x10c   :  { %v1935_v12 = vsel %vm1919_vm0, %v1619_v47, %v1927_v58  ;;  %v1645_v13 = vadd.f32 %v1644_v0, %v1631_v63  ;;  %v1686_v28 = vpop.f32.mrf.mxu3  ;;  %v4301_v0 = vld [vmem:[#allocation8 + $0xb4] sm:$0xf]  ;;  %v4299_v63 = vld [vmem:[#allocation8 + $0xa4] sm:$0xf] }
 0x10d   :  { %2336 = vmatpush.bf16.msrb.mxu0 %v3729_v26  ;;  %v4711_v20 = vpack.c.bf16 %v1935_v12, %v1931_v19  ;;  %v3738_v26 = vld [vmem:[#allocation8 + $0x58] sm:$0xf0]  ;;  %v3781_v15 = vor.u32 %v4299_v63, %v3778_v1  ;;  %v4319_v63 = vld [vmem:[#allocation8 + $0x144] sm:$0xf] }
 0x10e   :  { %2350 = vmatpush.bf16.msrb.mxu1 %v3793_v41  ;;  %v1659_v37 = vadd.f32 %v1658_v54, %v1645_v13  ;;  %v4305_v41 = vld [vmem:[#allocation8 + $0xd4] sm:$0xf]  ;;  %v3741_v9 = vor.u32 %v4289_v42, %v3738_v26  ;;  %v1674_v40 = vpop.f32.mrf.mxu2  ;;  %v3873_v54 = vor.u32 %v4324_v52, %v3872_v51  ;;  %v3698_v42 = vld [vmem:[#allocation8 + $0x8] sm:$0xf0]  ;;  %v3773_v26 = vor.u32 %v4297_v18, %v3770_v23 }
 0x10f   :  { %v3874_v51 = vld [vmem:[#allocation8 + $0x168] sm:$0xf0] }
 0x110   :  { %v1673_v30 = vadd.f32 %v1672_v2, %v1659_v37  ;;  %v4320_v2 = vld [vmem:[#allocation8 + $0x144] sm:$0xf0]  ;;  %v4279_v37 = vld [vmem:[#allocation8 + $0x4] sm:$0xf] }
 0x111   :  { %2337 = vmatpush.bf16.msrb.mxu0 %v3721_v34  ;;  %v3805_v34 = vor.u32 %v4305_v41, %v3802_v29  ;;  %v3701_v32 = vor.u32 %v4279_v37, %v3698_v42  ;;  %v4334_v37 = vld [vmem:[#allocation8 + $0x1b4] sm:$0xf0]  ;;  %v4313_v42 = vld [vmem:[#allocation8 + $0x114] sm:$0xf] }
 0x112   :  { %2351 = vmatpush.bf16.msrb.mxu1 %v3785_v38  ;;  %v3880_v38 = vld [vmem:[#allocation8 + $0x170] sm:$0xf]  ;;  %v1687_v47 = vadd.f32 %v1686_v28, %v1673_v30  ;;  %v3762_v28 = vld [vmem:[#allocation8 + $0x88] sm:$0xf0]  ;;  %v4318_v30 = vld [vmem:[#allocation8 + $0x134] sm:$0xf0] }
 0x113   :  { %v1646_v21 = vpop.f32.mrf.mxu0 }
 0x114   :  { %v1647_v31 = vadd.f32 %v1646_v21, %v1633_v24  ;;  %v1688_v58 = vpop.f32.mrf.mxu3 }
 0x115   :  { %2338 = vmatpush.bf16.msrb.mxu0 %v3713_v46  ;;  %v3881_v46 = vor.u32 %v4326_v39, %v3880_v38  ;;  %v3832_v39 = vld [vmem:[#allocation8 + $0x110] sm:$0xf] }
 0x116   :  { %2352 = vmatpush.bf16.msrb.mxu1 %v3777_v50  ;;  %v1661_v48 = vadd.f32 %v1660_v25, %v1647_v31  ;;  %v3722_v50 = vld [vmem:[#allocation8 + $0x38] sm:$0xf0] }
 0x117   :  { %2361 = vmatpush.bf16.msrb.mxu2 %v3881_v46  ;;  %v3725_v59 = vor.u32 %v4285_v45, %v3722_v50  ;;  %v4312_v45 = vld [vmem:[#allocation8 + $0x104] sm:$0xf0] }
 0x119   :  { %2339 = vmatpush.bf16.msrb.mxu0 %v3705_v55  ;;  %v1675_v55 = vadd.f32 %v1674_v40, %v1661_v48  ;;  %v4314_v40 = vld [vmem:[#allocation8 + $0x114] sm:$0xf0]  ;;  %v3882_v48 = vld [vmem:[#allocation8 + $0x178] sm:$0xf0] }
 0x11a   :  { %2353 = vmatpush.bf16.msrb.mxu1 %v3769_v62  ;;  %v3789_v62 = vor.u32 %v4301_v0, %v3786_v57  ;;  %v3944_v57 = vld [vmem:[#allocation8 + $0x1f0] sm:$0xf] }
 0x11b   :  { %2362 = vmatpush.bf16.msrb.mxu2 %v3873_v54  ;;  %v1689_v3 = vadd.f32 %v1688_v58, %v1675_v55  ;;  %v4342_v54 = vld [vmem:[#allocation8 + $0x1f4] sm:$0xf0]  ;;  %v4321_v55 = vld [vmem:[#allocation8 + $0x154] sm:$0xf] }
 0x11d   :  { %2340 = vmatpush.bf16.msrb.mxu0 %v3697_v53  ;;  %v3717_v53 = vor.u32 %v4283_v60, %v3714_v61  ;;  %v3936_v61 = vld [vmem:[#allocation8 + $0x1e0] sm:$0xf] }
 0x11e   :  { %2354 = vmatpush.bf16.msrb.mxu1 %v3761_v10  ;;  %v1714_v49 = vpop.f32.mrf.mxu1  ;;  %v3865_v10 = vor.u32 %v4322_v6, %v3864_v5 }
 0x11f   :  { %v1700_v43 = vpop.f32.mrf.mxu0 }
 0x120   :  { %2341 = vmatmul.bf16.vlgmr.msrb.gmra.mxu0 %v4711_v20  ;;  %v1701_v56 = vadd.f32 %v1700_v43, %v1687_v47  ;;  %2363 = vmatpush.bf16.msrb.mxu2 %v3865_v10  ;;  %v3833_v43 = vor.u32 %v4314_v40, %v3832_v39  ;;  %v4325_v47 = vld [vmem:[#allocation8 + $0x174] sm:$0xf]  ;;  %v3826_v39 = vld [vmem:[#allocation8 + $0x108] sm:$0xf0] }
 0x121   :  { %2389 = vmatpush.bf16.msra.mxu0 %v3757_v8  ;;  %v4281_v8 = vld [vmem:[#allocation8 + $0x14] sm:$0xf] }
 0x122   :  { %2403 = vmatpush.bf16.msra.mxu1 %v3821_v16  ;;  %v1715_v4 = vadd.f32 %v1714_v49, %v1701_v56  ;;  %v3856_v16 = vld [vmem:[#allocation8 + $0x140] sm:$0xf]  ;;  %v3709_v24 = vor.u32 %v4281_v8, %v3706_v14  ;;  %v3885_v49 = vor.u32 %v4325_v47, %v3882_v48  ;;  %v3866_v56 = vld [vmem:[#allocation8 + $0x158] sm:$0xf0]  ;;  %v4338_v8 = vld [vmem:[#allocation8 + $0x1d4] sm:$0xf0] }
 0x123   :  { %v3857_v19 = vor.u32 %v4320_v2, %v3856_v16  ;;  %v3869_v58 = vor.u32 %v4321_v55, %v3866_v56  ;;  %v4317_v10 = vld [vmem:[#allocation8 + $0x134] sm:$0xf]  ;;  %v4336_v16 = vld [vmem:[#allocation8 + $0x1c4] sm:$0xf0]  ;;  %v4315_v2 = vld [vmem:[#allocation8 + $0x124] sm:$0xf] }
 0x124   :  { %v1924_v21 = vmul.f32 0.2, %v1715_v4  ;;  %vm1916_vm2 = vcmp.gt.f32.partialorder %v1715_v4, 0.0  ;;  %v3896_v47 = vld [vmem:[#allocation8 + $0x190] sm:$0xf] }
 0x125   :  { %2390 = vmatpush.bf16.msra.mxu0 %v3749_v22  ;;  %2364 = vmatpush.bf16.msrb.mxu2 %v3857_v19  ;;  %v3842_v19 = vld [vmem:[#allocation8 + $0x128] sm:$0xf0]  ;;  %v4330_v48 = vld [vmem:[#allocation8 + $0x194] sm:$0xf0]  ;;  %v3946_v56 = vld [vmem:[#allocation8 + $0x1f8] sm:$0xf0] }
 0x126   :  { %2404 = vmatpush.bf16.msra.mxu1 %v3813_v27  ;;  %v1716_v13 = vpop.f32.mrf.mxu1  ;;  %v4295_v27 = vld [vmem:[#allocation8 + $0x84] sm:$0xf]  ;;  %v1932_v41 = vsel %vm1916_vm2, %v1715_v4, %v1924_v21  ;;  %v1728_v50 = vpop.f32.mrf.mxu2 }
 0x127   :  { %v1702_v7 = vpop.f32.mrf.mxu0  ;;  %v3765_v36 = vor.u32 %v4295_v27, %v3762_v28  ;;  %v1742_v0 = vpop.f32.mrf.mxu3 }
 0x128   :  { %v1703_v12 = vadd.f32 %v1702_v7, %v1689_v3  ;;  %v3858_v3 = vld [vmem:[#allocation8 + $0x148] sm:$0xf0] }
 0x129   :  { %2391 = vmatpush.bf16.msra.mxu0 %v3741_v9  ;;  %v3848_v9 = vld [vmem:[#allocation8 + $0x130] sm:$0xf]  ;;  %v3861_v5 = vor.u32 %v4319_v63, %v3858_v3  ;;  %v4339_v63 = vld [vmem:[#allocation8 + $0x1e4] sm:$0xf] }
 0x12a   :  { %2405 = vmatpush.bf16.msra.mxu1 %v3805_v34  ;;  %v1717_v22 = vadd.f32 %v1716_v13, %v1703_v12  ;;  %v3849_v33 = vor.u32 %v4318_v30, %v3848_v9  ;;  %v3840_v34 = vld [vmem:[#allocation8 + $0x120] sm:$0xf]  ;;  %v3850_v13 = vld [vmem:[#allocation8 + $0x138] sm:$0xf0] }
 0x12b   :  { %v3841_v38 = vor.u32 %v4316_v35, %v3840_v34  ;;  %v3853_v14 = vor.u32 %v4317_v10, %v3850_v13  ;;  %v4332_v34 = vld [vmem:[#allocation8 + $0x1a4] sm:$0xf0]  ;;  %v4311_v35 = vld [vmem:[#allocation8 + $0x104] sm:$0xf] }
 0x12c   :  { %vm1920_vm3 = vcmp.gt.f32.partialorder %v1717_v22, 0.0  ;;  %v1928_v25 = vmul.f32 0.2, %v1717_v22  ;;  %2365 = vmatpush.bf16.msrb.mxu2 %v3849_v33  ;;  %v3904_v33 = vld [vmem:[#allocation8 + $0x1a0] sm:$0xf] }
 0x12d   :  { %2392 = vmatpush.bf16.msra.mxu0 %v3733_v44  ;;  %v3824_v44 = vld [vmem:[#allocation8 + $0x100] sm:$0xf]  ;;  %v4335_v13 = vld [vmem:[#allocation8 + $0x1c4] sm:$0xf] }
 0x12e   :  { %2406 = vmatpush.bf16.msra.mxu1 %v3797_v11  ;;  %v1936_v29 = vsel %vm1920_vm3, %v1717_v22, %v1928_v25  ;;  %v3825_v46 = vor.u32 %v4312_v45, %v3824_v44  ;;  %v4323_v11 = vld [vmem:[#allocation8 + $0x164] sm:$0xf]  ;;  %v1730_v60 = vpop.f32.mrf.mxu2  ;;  %v3845_v22 = vor.u32 %v4315_v2, %v3842_v19  ;;  %v362_v2 = vperm.slane %v4700_v17, 3  ;;  %v3914_v19 = vld [vmem:[#allocation8 + $0x1b8] sm:$0xf0] }
 0x12f   :  { %v1940_v31 = vpack.c.bf16 %v1936_v29, %v1932_v41  ;;  %v3877_v52 = vor.u32 %v4323_v11, %v3874_v51  ;;  %v1744_v7 = vpop.f32.mrf.mxu3 }
 0x130   :  { %2366 = vmatpush.bf16.msrb.mxu2 %v3841_v38  ;;  %v3905_v38 = vor.u32 %v4332_v34, %v3904_v33 }
 0x131   :  { %2393 = vmatpush.bf16.msra.mxu0 %v3725_v59  ;;  %2355 = vmatmul.bf16.vlgmr.msrb.gmra.mxu1 %v1940_v31  ;;  %v361_v59 = vperm.slane %v4700_v17, 2 }
 0x132   :  { %2407 = vmatpush.bf16.msra.mxu1 %v3789_v62  ;;  %v4340_v62 = vld [vmem:[#allocation8 + $0x1e4] sm:$0xf0] }
 0x133   :  { %v3937_v1 = vor.u32 %v4340_v62, %v3936_v61  ;;  %v1729_v6 = vadd.f32 %v1728_v50, %v361_v59  ;;  %v1731_v25 = vadd.f32 %v1730_v60, %v361_v59  ;;  %v3897_v50 = vor.u32 %v4330_v48, %v3896_v47 }
 0x134   :  { %2367 = vmatpush.bf16.msrb.mxu2 %v3833_v43  ;;  %v3829_v43 = vor.u32 %v4311_v35, %v3826_v39  ;;  %v4327_v35 = vld [vmem:[#allocation8 + $0x184] sm:$0xf] }
 0x135   :  { %2394 = vmatpush.bf16.msra.mxu0 %v3717_v53  ;;  %v3928_v53 = vld [vmem:[#allocation8 + $0x1d0] sm:$0xf]  ;;  %v1743_v18 = vadd.f32 %v1742_v0, %v1729_v6  ;;  %v1745_v30 = vadd.f32 %v1744_v7, %v1731_v25  ;;  %v3888_v0 = vld [vmem:[#allocation8 + $0x180] sm:$0xf]  ;;  %v4337_v7 = vld [vmem:[#allocation8 + $0x1d4] sm:$0xf] }
 0x136   :  { %2408 = vmatpush.bf16.msra.mxu1 %v3781_v15  ;;  %v3929_v12 = vor.u32 %v4338_v8, %v3928_v53  ;;  %v3920_v15 = vld [vmem:[#allocation8 + $0x1c0] sm:$0xf]  ;;  %v3930_v53 = vld [vmem:[#allocation8 + $0x1d8] sm:$0xf0]  ;;  %v3906_v25 = vld [vmem:[#allocation8 + $0x1a8] sm:$0xf0] }
 0x137   :  { %v3921_v23 = vor.u32 %v4336_v16, %v3920_v15 }
 0x138   :  { %2368 = vmatpush.bf16.msrb.mxu2 %v3825_v46 }
 0x139   :  { %2395 = vmatpush.bf16.msra.mxu0 %v3709_v24  ;;  %v3912_v24 = vld [vmem:[#allocation8 + $0x1b0] sm:$0xf] }
 0x13a   :  { %2409 = vmatpush.bf16.msra.mxu1 %v3773_v26  ;;  %v3834_v26 = vld [vmem:[#allocation8 + $0x118] sm:$0xf0]  ;;  %v3913_v41 = vor.u32 %v4334_v37, %v3912_v24  ;;  %v4331_v37 = vld [vmem:[#allocation8 + $0x1a4] sm:$0xf] }
 0x13b   :  { %v3837_v9 = vor.u32 %v4313_v42, %v3834_v26  ;;  %v3909_v42 = vor.u32 %v4331_v37, %v3906_v25 }
 0x13c   :  { %2417 = vmatpush.bf16.msra.mxu2 %v3885_v49 }
 0x13d   :  { %2396 = vmatpush.bf16.msra.mxu0 %v3701_v32 }
 0x13e   :  { %2410 = vmatpush.bf16.msra.mxu1 %v3765_v36  ;;  %v1770_v21 = vpop.f32.mrf.mxu1 }
 0x13f   :  { %v1756_v4 = vpop.f32.mrf.mxu0 }
 0x140   :  { %2397 = vmatmul.bf16.vlgmr.msra.gmra.mxu0 %v4711_v20  ;;  %2418 = vmatpush.bf16.msra.mxu2 %v3877_v52  ;;  %v3945_v20 = vor.u32 %v4342_v54, %v3944_v57  ;;  %v1757_v28 = vadd.f32 %v1756_v4, %v1743_v18  ;;  %v4328_v57 = vld [vmem:[#allocation8 + $0x184] sm:$0xf0] }
 0x141   :  { %2411 = vmatmul.bf16.vlgmr.msra.gmra.mxu1 %v1940_v31  ;;  %v3889_v55 = vor.u32 %v4328_v57, %v3888_v0 }
 0x142   :  { %2375 = vmatpush.bf16.msrb.mxu3 %v3945_v20  ;;  %v1771_v32 = vadd.f32 %v1770_v21, %v1757_v28  ;;  %v4341_v20 = vld [vmem:[#allocation8 + $0x1f4] sm:$0xf] }
 0x143   :  { %v4329_v28 = vld [vmem:[#allocation8 + $0x194] sm:$0xf] }
 0x144   :  { %2419 = vmatpush.bf16.msra.mxu2 %v3869_v58  ;;  %v3949_v58 = vor.u32 %v4341_v20, %v3946_v56 }
 0x146   :  { %2376 = vmatpush.bf16.msrb.mxu3 %v3937_v1  ;;  %v1784_v27 = vpop.f32.mrf.mxu2  ;;  %v1798_v31 = vpop.f32.mrf.mxu3  ;;  %v3938_v1 = vld [vmem:[#allocation8 + $0x1e8] sm:$0xf0] }
 0x147   :  { %v1758_v29 = vpop.f32.mrf.mxu0  ;;  %v1772_v40 = vpop.f32.mrf.mxu1  ;;  %v1785_v44 = vadd.f32 %v1784_v27, %v1771_v32  ;;  %v3941_v3 = vor.u32 %v4339_v63, %v3938_v1  ;;  %v4358_v63 = vld [vmem:[#allocation10 + $0x78] sm:$0xff]  ;;  %v4345_v1 = vld [vmem:[#allocation10 + $0x10] sm:$0xff] }
 0x148   :  { %2420 = vmatpush.bf16.msra.mxu2 %v3861_v5  ;;  %v1759_v36 = vadd.f32 %v1758_v29, %v1745_v30  ;;  %2605 = vmatpush.bf16.msrb.mxu1 %v4358_v63 }
 0x149   :  { %v1799_v11 = vadd.f32 %v1798_v31, %v1785_v44 }
 0x14a   :  { %2377 = vmatpush.bf16.msrb.mxu3 %v3929_v12  ;;  %v1773_v49 = vadd.f32 %v1772_v40, %v1759_v36  ;;  %v3933_v12 = vor.u32 %v4337_v7, %v3930_v53  ;;  %v3890_v36 = vld [vmem:[#allocation8 + $0x188] sm:$0xf0]  ;;  %v4355_v7 = vld [vmem:[#allocation10 + $0x60] sm:$0xff]  ;;  %v4354_v53 = vld [vmem:[#allocation10 + $0x58] sm:$0xff] }
 0x14c   :  { %2421 = vmatpush.bf16.msra.mxu2 %v3853_v14  ;;  %v3922_v14 = vld [vmem:[#allocation8 + $0x1c8] sm:$0xf0] }
 0x14d   :  { %v3925_v16 = vor.u32 %v4335_v13, %v3922_v14  ;;  %v2007_v14 = vld [vmem:[%s4736_s4] sm:$0x3] }
 0x14e   :  { %2378 = vmatpush.bf16.msrb.mxu3 %v3921_v23  ;;  %v1786_v45 = vpop.f32.mrf.mxu2  ;;  %v1800_v52 = vpop.f32.mrf.mxu3  ;;  %v4333_v23 = vld [vmem:[#allocation8 + $0x1b4] sm:$0xf] }
 0x14f   :  { %v1787_v51 = vadd.f32 %v1786_v45, %v1773_v49  ;;  %v3917_v21 = vor.u32 %v4333_v23, %v3914_v19 }
 0x150   :  { %2422 = vmatpush.bf16.msra.mxu2 %v3845_v22 }
 0x151   :  { %v1801_v59 = vadd.f32 %v1800_v52, %v1787_v51 }
 0x152   :  { %2379 = vmatpush.bf16.msrb.mxu3 %v3913_v41  ;;  %v3898_v41 = vld [vmem:[#allocation8 + $0x198] sm:$0xf0] }
 0x153   :  { %v3901_v17 = vor.u32 %v4329_v28, %v3898_v41 }
 0x154   :  { %2423 = vmatpush.bf16.msra.mxu2 %v3837_v9 }
 0x156   :  { %2380 = vmatpush.bf16.msrb.mxu3 %v3905_v38  ;;  %v3893_v38 = vor.u32 %v4327_v35, %v3890_v36 }
 0x158   :  { %2424 = vmatpush.bf16.msra.mxu2 %v3829_v43 }
 0x15a   :  { %2381 = vmatpush.bf16.msrb.mxu3 %v3897_v50 }
 0x15e   :  { %2382 = vmatpush.bf16.msrb.mxu3 %v3889_v55  ;;  %v1826_v10 = vpop.f32.mrf.mxu1 }
 0x15f   :  { %v1812_v46 = vpop.f32.mrf.mxu0  ;;  %v1827_v22 = vadd.f32 %v1826_v10, %v362_v2 }
 0x160   :  { %v1813_v54 = vadd.f32 %v1812_v46, %v1799_v11 }
 0x162   :  { %2431 = vmatpush.bf16.msra.mxu3 %v3949_v58  ;;  %v1925_v61 = vmul.f32 0.2, %v1813_v54  ;;  %vm1917_vm4 = vcmp.gt.f32.partialorder %v1813_v54, 0.0  ;;  %v4350_v58 = vld [vmem:[#allocation10 + $0x38] sm:$0xff] }
 0x163   :  { %2591 = vmatpush.bf16.msrb.mxu0 %v4350_v58  ;;  %v4363_v58 = vld [vmem:[#allocation11 + $0x20] sm:$0xff] }
 0x164   :  { %v1933_v5 = vsel %vm1917_vm4, %v1813_v54, %v1925_v61  ;;  %v4347_v61 = vld [vmem:[#allocation10 + $0x20] sm:$0xff] }
 0x166   :  { %2432 = vmatpush.bf16.msra.mxu3 %v3941_v3  ;;  %v1840_v15 = vpop.f32.mrf.mxu2  ;;  %v1854_v18 = vpop.f32.mrf.mxu3  ;;  %v4357_v3 = vld [vmem:[#allocation10 + $0x70] sm:$0xff] }
 0x167   :  { %v1814_v60 = vpop.f32.mrf.mxu0  ;;  %v1828_v24 = vpop.f32.mrf.mxu1  ;;  %v1841_v26 = vadd.f32 %v1840_v15, %v1827_v22  ;;  %2606 = vmatpush.bf16.msrb.mxu1 %v4357_v3  ;;  %v4352_v15 = vld [vmem:[#allocation10 + $0x48] sm:$0xff] }
 0x168   :  { %v1815_v62 = vadd.f32 %v1814_v60, %v1801_v59  ;;  %v1829_v29 = vadd.f32 %v1828_v24, %v362_v2  ;;  %v4349_v59 = vld [vmem:[#allocation10 + $0x30] sm:$0xff]  ;;  %v4348_v60 = vld [vmem:[#allocation10 + $0x28] sm:$0xff]  ;;  %v4351_v2 = vld [vmem:[#allocation10 + $0x40] sm:$0xff] }
 0x169   :  { %v1855_v31 = vadd.f32 %v1854_v18, %v1841_v26  ;;  %2592 = vmatpush.bf16.msrb.mxu0 %v4349_v59  ;;  %v4362_v59 = vld [vmem:[#allocation11 + $0x18] sm:$0xff] }
 0x16a   :  { %vm1921_vm5 = vcmp.gt.f32.partialorder %v1815_v62, 0.0  ;;  %v1929_v4 = vmul.f32 0.2, %v1815_v62  ;;  %2433 = vmatpush.bf16.msra.mxu3 %v3933_v12  ;;  %v4353_v12 = vld [vmem:[#allocation10 + $0x50] sm:$0xff] }
 0x16c   :  { %v1937_v6 = vsel %vm1921_vm5, %v1815_v62, %v1929_v4  ;;  %v4346_v62 = vld [vmem:[#allocation10 + $0x18] sm:$0xff]  ;;  %v4344_v4 = vld [vmem:[#allocation10 + $0x8] sm:$0xff] }
 0x16d   :  { %v1941_v8 = vpack.c.bf16 %v1937_v6, %v1933_v5  ;;  %2593 = vmatpush.bf16.msrb.mxu0 %v4348_v60  ;;  %v4356_v5 = vld [vmem:[#allocation10 + $0x68] sm:$0xff]  ;;  %v4343_v6 = vld [vmem:[#allocation10] sm:$0xff]  ;;  %v4361_v60 = vld [vmem:[#allocation11 + $0x10] sm:$0xff] }
 0x16e   :  { %2434 = vmatpush.bf16.msra.mxu3 %v3925_v16  ;;  %v1842_v27 = vpop.f32.mrf.mxu2  ;;  %v1856_v9 = vpop.f32.mrf.mxu3  ;;  %2607 = vmatpush.bf16.msrb.mxu1 %v4356_v5  ;;  %v2009_v16 = vperm.slane %v2007_v14, 0 }
 0x16f   :  { %2369 = vmatmul.bf16.vlgmr.msrb.gmra.mxu2 %v1941_v8  ;;  %v1843_v33 = vadd.f32 %v1842_v27, %v1829_v29 }
 0x171   :  { %v1857_v40 = vadd.f32 %v1856_v9, %v1843_v33  ;;  %2594 = vmatpush.bf16.msrb.mxu0 %v4347_v61  ;;  %v4360_v61 = vld [vmem:[#allocation11 + $0x8] sm:$0xff] }
 0x172   :  { %2435 = vmatpush.bf16.msra.mxu3 %v3917_v21  ;;  %2608 = vmatpush.bf16.msrb.mxu1 %v4355_v7 }
 0x175   :  { %2595 = vmatpush.bf16.msrb.mxu0 %v4346_v62  ;;  %v4359_v62 = vld [vmem:[#allocation11] sm:$0xff] }
 0x176   :  { %2436 = vmatpush.bf16.msra.mxu3 %v3909_v42  ;;  %2609 = vmatpush.bf16.msrb.mxu1 %v4354_v53 }
 0x179   :  { %2596 = vmatpush.bf16.msrb.mxu0 %v4345_v1  ;;  %v4382_v1 = vld [vmem:[%s4738_s6] ss:$0 sm:$0xff]  ;;  %s4584_s6 = smov [#allocation13]  }
 0x17a   :  { %2437 = vmatpush.bf16.msra.mxu3 %v3901_v17  ;;  %2610 = vmatpush.bf16.msrb.mxu1 %v4353_v12 }
 0x17d   :  { %2597 = vmatpush.bf16.msrb.mxu0 %v4344_v4 }
 0x17e   :  { %v1882_v32 = vpop.f32.mrf.mxu1  ;;  %2438 = vmatpush.bf16.msra.mxu3 %v3893_v38  ;;  %2611 = vmatpush.bf16.msrb.mxu1 %v4352_v15 }
 0x17f   :  { %v1868_v30 = vpop.f32.mrf.mxu0  ;;  %2425 = vmatmul.bf16.vlgmr.msra.gmra.mxu2 %v1941_v8 }
 0x180   :  { %v1869_v34 = vadd.f32 %v1868_v30, %v1855_v31  ;;  %v2010_v31 = vperm.slane %v2007_v14, 1 }
 0x181   :  { %2598 = vmatpush.bf16.msrb.mxu0 %v4343_v6 }
 0x182   :  { %v1883_v43 = vadd.f32 %v1882_v32, %v1869_v34  ;;  %2612 = vmatpush.bf16.msrb.mxu1 %v4351_v2 }
 0x186   :  { %v1896_v39 = vpop.f32.mrf.mxu2  ;;  %v1910_v44 = vpop.f32.mrf.mxu3 }
 0x187   :  { %v1870_v45 = vpop.f32.mrf.mxu0  ;;  %v1897_v46 = vadd.f32 %v1896_v39, %v1883_v43  ;;  %v1884_v48 = vpop.f32.mrf.mxu1 }
 0x188   :  { %v1871_v47 = vadd.f32 %v1870_v45, %v1857_v40 }
 0x189   :  { %v1911_v49 = vadd.f32 %v1910_v44, %v1897_v46 }
 0x18a   :  { %v1885_v50 = vadd.f32 %v1884_v48, %v1871_v47 }
 0x18b   :  { %v1926_v0 = vmul.f32 0.2, %v1911_v49  ;;  %vm1918_vm6 = vcmp.gt.f32.partialorder %v1911_v49, 0.0 }
 0x18d   :  { %v1934_v55 = vsel %vm1918_vm6, %v1911_v49, %v1926_v0 }
 0x18e   :  { %v1898_v11 = vpop.f32.mrf.mxu2  ;;  %v1912_v52 = vpop.f32.mrf.mxu3 }
 0x18f   :  { %v1899_v51 = vadd.f32 %v1898_v11, %v1885_v50 }
 0x191   :  { %v1913_v57 = vadd.f32 %v1912_v52, %v1899_v51 }
 0x193   :  { %vm1922_vm7 = vcmp.gt.f32.partialorder %v1913_v57, 0.0  ;;  %v1930_v54 = vmul.f32 0.2, %v1913_v57 }
 0x195   :  { %v1938_v20 = vsel %vm1922_vm7, %v1913_v57, %v1930_v54 }
 0x196   :  { %v1942_v56 = vpack.c.bf16 %v1938_v20, %v1934_v55  ;;  %v4366_v55 = vld [vmem:[#allocation11 + $0x38] sm:$0xff]  ;;  %v4365_v20 = vld [vmem:[#allocation11 + $0x30] sm:$0xff] }
 0x197   :  { %2694 = vmatpush.bf16.msrb.mxu2 %v4366_v55 }
 0x198   :  { %2383 = vmatmul.bf16.vlgmr.msrb.gmra.mxu3 %v1942_v56 }
 0x19b   :  { %2695 = vmatpush.bf16.msrb.mxu2 %v4365_v20 }
 0x19d   :  { %v2342_v8 = vpop.f32.mrf.mxu0 }
 0x19e   :  { %v2343_v19 = vadd.f32 %v2342_v8, %v2009_v16 }
 0x1a5   :  { %v2344_v18 = vpop.f32.mrf.mxu0 }
 0x1a6   :  { %v2345_v37 = vadd.f32 %v2344_v18, %v2009_v16  ;;  %v4383_v16 = vld [vmem:[%s4740_s8] ss:$0 sm:$0xff]  ;;  %s2752_s8 = sshll.u32 %s4584_s6, 4  ;;  %s2753_s8 = int_to_ptr.vmem [resolvable:$true] %s2752_s8 }
 0x1a8   :  { %2439 = vmatmul.bf16.vlgmr.msra.gmra.mxu3 %v1942_v56  ;;  %v4364_v56 = vld [vmem:[#allocation11 + $0x28] sm:$0xff] }
 0x1a9   :  { %2696 = vmatpush.bf16.msrb.mxu2 %v4364_v56 }
 0x1ad   :  { %2697 = vmatpush.bf16.msrb.mxu2 %v4363_v58 }
 0x1ae   :  { %v2356_v10 = vpop.f32.mrf.mxu1 }
 0x1af   :  { %v2357_v24 = vadd.f32 %v2356_v10, %v2343_v19 }
 0x1b1   :  { %2698 = vmatpush.bf16.msrb.mxu2 %v4362_v59 }
 0x1b5   :  { %2699 = vmatpush.bf16.msrb.mxu2 %v4361_v60 }
 0x1b6   :  { %v2358_v23 = vpop.f32.mrf.mxu1 }
 0x1b7   :  { %v2359_v42 = vadd.f32 %v2358_v23, %v2345_v37 }
 0x1b9   :  { %2700 = vmatpush.bf16.msrb.mxu2 %v4360_v61 }
 0x1bd   :  { %v2398_v27 = vpop.f32.mrf.mxu0  ;;  %2701 = vmatpush.bf16.msrb.mxu2 %v4359_v62 }
 0x1be   :  { %v2412_v41 = vpop.f32.mrf.mxu1  ;;  %v2399_v36 = vadd.f32 %v2398_v27, %v2010_v31 }
 0x1c0   :  { %v2413_v40 = vadd.f32 %v2412_v41, %v2399_v36 }
 0x1c5   :  { %v2400_v38 = vpop.f32.mrf.mxu0 }
 0x1c6   :  { %v2414_v43 = vpop.f32.mrf.mxu1  ;;  %v2401_v44 = vadd.f32 %v2400_v38, %v2010_v31 }
 0x1c8   :  { %v2415_v47 = vadd.f32 %v2414_v43, %v2401_v44 }
 0x1f2   :  { %v2370_v13 = vpop.f32.mrf.mxu2 }
 0x1f3   :  { %v2371_v25 = vadd.f32 %v2370_v13, %v2357_v24 }
 0x1fa   :  { %v2372_v21 = vpop.f32.mrf.mxu2 }
 0x1fb   :  { %v2373_v28 = vadd.f32 %v2372_v21, %v2359_v42 }
 0x202   :  { %v2426_v17 = vpop.f32.mrf.mxu2 }
 0x203   :  { %v2427_v45 = vadd.f32 %v2426_v17, %v2413_v40 }
 0x20a   :  { %v2428_v46 = vpop.f32.mrf.mxu2 }
 0x20b   :  { %v2429_v49 = vadd.f32 %v2428_v46, %v2415_v47 }
 0x21b   :  { %v2384_v22 = vpop.f32.mrf.mxu3 }
 0x21c   :  { %v2385_v26 = vadd.f32 %v2384_v22, %v2371_v25 }
 0x21e   :  { %v2449_v9 = vmul.f32 0.2, %v2385_v26  ;;  %vm2445_vm8 = vcmp.gt.f32.partialorder %v2385_v26, 0.0 }
 0x220   :  { %v2453_v33 = vsel %vm2445_vm8, %v2385_v26, %v2449_v9 }
 0x223   :  { %v2386_v29 = vpop.f32.mrf.mxu3 }
 0x224   :  { %v2387_v30 = vadd.f32 %v2386_v29, %v2373_v28 }
 0x226   :  { %vm2447_vm9 = vcmp.gt.f32.partialorder %v2387_v30, 0.0  ;;  %v2451_v32 = vmul.f32 0.2, %v2387_v30 }
 0x228   :  { %v2455_v34 = vsel %vm2447_vm9, %v2387_v30, %v2451_v32 }
 0x229   :  { %v2457_v35 = vpack.c.bf16 %v2455_v34, %v2453_v33 }
 0x22b   :  { %v2440_v39 = vpop.f32.mrf.mxu3  ;;  %2599 = vmatmul.bf16.vlgmr.msrb.gmra.mxu0 %v2457_v35 }
 0x22c   :  { %v2441_v48 = vadd.f32 %v2440_v39, %v2427_v45 }
 0x22e   :  { %v2450_v11 = vmul.f32 0.2, %v2441_v48  ;;  %vm2446_vm10 = vcmp.gt.f32.partialorder %v2441_v48, 0.0 }
 0x230   :  { %v2454_v0 = vsel %vm2446_vm10, %v2441_v48, %v2450_v11 }
 0x233   :  { %v2442_v50 = vpop.f32.mrf.mxu3 }
 0x234   :  { %v2443_v51 = vadd.f32 %v2442_v50, %v2429_v49 }
 0x236   :  { %vm2448_vm11 = vcmp.gt.f32.partialorder %v2443_v51, 0.0  ;;  %v2452_v52 = vmul.f32 0.2, %v2443_v51 }
 0x238   :  { %v2456_v57 = vsel %vm2448_vm11, %v2443_v51, %v2452_v52 }
 0x239   :  { %v2458_v54 = vpack.c.bf16 %v2456_v57, %v2454_v0 }
 0x23b   :  { %2613 = vmatmul.bf16.vlgmr.msrb.gmra.mxu1 %v2458_v54 }
 0x2a8   :  { %v2600_v63 = vpop.f32.mrf.mxu0 }
 0x2a9   :  { %v2601_v4 = vadd.f32 %v4382_v1, %v2600_v63 }
 0x2b0   :  { %v2602_v5 = vpop.f32.mrf.mxu0 }
 0x2b1   :  { %v2603_v7 = vadd.f32 %v4382_v1, %v2602_v5 }
 0x2b8   :  { %v2614_v3 = vpop.f32.mrf.mxu1 }
 0x2b9   :  { %v2615_v6 = vadd.f32 %v2614_v3, %v2601_v4 }
 0x2bb   :  { %v2621_v8 = vmul.f32 0.2, %v2615_v6  ;;  %vm2619_vm12 = vcmp.gt.f32.partialorder %v2615_v6, 0.0 }
 0x2bd   :  { %v2623_v13 = vsel %vm2619_vm12, %v2615_v6, %v2621_v8 }
 0x2c0   :  { %v2616_v53 = vpop.f32.mrf.mxu1 }
 0x2c1   :  { %v2617_v10 = vadd.f32 %v2616_v53, %v2603_v7 }
 0x2c3   :  { %vm2620_vm13 = vcmp.gt.f32.partialorder %v2617_v10, 0.0  ;;  %v2622_v12 = vmul.f32 0.2, %v2617_v10 }
 0x2c5   :  { %v2624_v14 = vsel %vm2620_vm13, %v2617_v10, %v2622_v12 }
 0x2c6   :  { %v2625_v15 = vpack.c.bf16 %v2624_v14, %v2623_v13 }
 0x2c8   :  { %2702 = vmatmul.bf16.vlgmr.msrb.gmra.mxu2 %v2625_v15 }
 0x34b   :  { %v2703_v2 = vpop.f32.mrf.mxu2 }
 0x34c   :  { %v2704_v18 = vadd.f32 %v4383_v16, %v2703_v2 }
 0x34e   :  { %v4046_v23 = vmul.f32 -1.442695, %v2704_v18 }
 0x350   :  { %4384 = vpow2.f32 %v4046_v23 }
 0x353   :  { %v2705_v19 = vpop.f32.mrf.mxu2 }
 0x354   :  { %v2706_v21 = vadd.f32 %v4383_v16, %v2705_v19 }
 0x356   :  { %v4385_v22 = vpop.eup %4384  ;;  %v4047_v24 = vmul.f32 -1.442695, %v2706_v21 }
 0x357   :  { %v2714_v37 = vadd.f32 1.0, %v4385_v22 }
 0x358   :  { %4386 = vpow2.f32 %v4047_v24 }
 0x359   :  { %4388 = vrcp.f32 %v2714_v37  ;;  %v2727_v41 = vand.u32 2147483648, %v2714_v37  ;;  %v2725_v9 = vand.u32 2147483647, %v2714_v37  ;;  %vm2721_vm15 = vweird.f32 %v2714_v37 }
 0x35b   :  { %v2728_v31 = vor.u32 1.1754944e-38, %v2727_v41  ;;  %vm2726_vm1 = vcmp.eq.f32.partialorder %v2725_v9, 8.507059e+37 }
 0x35e   :  { %v4387_v25 = vpop.eup %4386 }
 0x35f   :  { %v4389_v42 = vpop.eup %4388  ;;  %v2715_v26 = vadd.f32 1.0, %v4387_v25 }
 0x360   :  { %v2717_v27 = vmul.f32 %v4389_v42, %v2714_v37  ;;  %vm2722_vm14 = vweird.f32 %v4389_v42 }
 0x361   :  { %4390 = vrcp.f32 %v2715_v26  ;;  %vm2723_vm0 = vmor %vm2721_vm15, %vm2722_vm14  ;;  %v2742_v36 = vand.u32 2147483648, %v2715_v26  ;;  %v2740_v39 = vand.u32 2147483647, %v2715_v26  ;;  %vm2736_vm3 = vweird.f32 %v2715_v26 }
 0x362   :  { %v2718_v28 = vsub.f32 1.0, %v2717_v27 }
 0x363   :  { %v2743_v43 = vor.u32 1.1754944e-38, %v2742_v36  ;;  %vm2741_vm5 = vcmp.eq.f32.partialorder %v2740_v39, 8.507059e+37 }
 0x364   :  { %v2719_v29 = vmul.f32 %v4389_v42, %v2718_v28 }
 0x366   :  { %v2720_v30 = vadd.f32 %v4389_v42, %v2719_v29 }
 0x367   :  { %v4391_v17 = vpop.eup %4390 }
 0x368   :  { %v2732_v32 = vmul.f32 %v4391_v17, %v2715_v26  ;;  %v2724_v33 = vsel %vm2723_vm0, %v4389_v42, %v2720_v30  ;;  %vm2737_vm2 = vweird.f32 %v4391_v17 }
 0x369   :  { %v2729_v34 = vsel %vm2726_vm1, %v2728_v31, %v2724_v33  ;;  %vm2738_vm4 = vmor %vm2736_vm3, %vm2737_vm2 }
 0x36a   :  { %v2733_v35 = vsub.f32 1.0, %v2732_v32  ;;  %2746 = vst [vmem:[#allocation13] sm:$0xff] %v2729_v34 }
 0x36c   :  { %v2734_v38 = vmul.f32 %v4391_v17, %v2733_v35 }
 0x36e   :  { %v2735_v40 = vadd.f32 %v4391_v17, %v2734_v38 }
 0x370   :  { %v2739_v44 = vsel %vm2738_vm4, %v4391_v17, %v2735_v40 }
 0x371   :  { %v2744_v45 = vsel %vm2741_vm5, %v2743_v43, %v2739_v44 }
 0x372   :  { %2747 = vst [vmem:[#allocation13 + $0x8] sm:$0xff] %v2744_v45 }
 0x373   :  { %2760 = dma.vmem_to_hbm [thread:$0]  %s2753_s8, 256, %s2755_s27, [#allocation4], %s4574_s21, %s4574_s21, %s4575_s22  }
 0x374   :  { %4568 = dma.done.wait [#allocation4], 256  }
 0x375   :  { %4569 = vsyncadd [#allocation4], 4294967040 }
 0x376   :  { %2765 = vsyncpa [#allocation3], 1 }
 0x377   :  { %2766 = vsyncpa [#allocation6], 1 }
 0x378   :  { %2767 = vsyncpa [#allocation9], 1 }
 0x379   :  { %2768 = vsyncpa [#allocation12], 1 }
 0x37a   :  { %2769 = vsyncpa [#allocation4], 1 }

</bundles_post_ra>
